<compile_context>
chip_gen: v7x
topology: tpu7x:2x2x1
jax: 0.10.0
libtpu: 0.0.40
codegen_flags: <defaults>
</compile_context>

<pallas_src>
import functools

import jax
import jax.numpy as jnp
from jax.experimental import pallas as pl
from jax.experimental.pallas import tpu as pltpu


# ---------------------------------------------------------------------------
# Pallas kernel.
# ---------------------------------------------------------------------------
def _combined_kernel(
    x_ref,      # (TB, C, TS)       spatial tile of flattened NCHW input (f32)
    wsh_ref,    # (C, SH_FEAT)      shufflenet stand-in projection (bf16)
    bsh_ref,    # (1, SH_FEAT)      f32
    wrn_ref,    # (C, RN_FEAT)      resnet stand-in projection (bf16)
    brn_ref,    # (1, RN_FEAT)      f32
    wfc_ref,    # (SH_FEAT, 1)      first_classifier (kept f32: threshold-sensitive)
    bfc_ref,    # (1, 1)            f32
    w1s_ref,    # (SH_FEAT, FILTERS) fc1 split, shufflenet half (bf16)
    w1r_ref,    # (RN_FEAT, FILTERS) fc1 split, resnet half     (bf16)
    b1_ref,     # (1, FILTERS)      f32
    w2_ref,     # (FILTERS, DENSE)  fc2 (bf16)
    b2_ref,     # (1, DENSE)        f32
    wf_ref,     # (DENSE, 1)        final_classifier (f32)
    bf_ref,     # (1, 1)            f32
    out_ref,    # (TB, 2)  [:, 0]=final_output   [:, 1]=first_classifier_output
    pool_acc,   # scratch (TB, C)   f32 pooling accumulator
    *,
    threshold,
    cond_weight,
    inv_hw,
):
    f32 = jnp.float32
    bf16 = jnp.bfloat16
    k = pl.program_id(1)

    @pl.when(k == 0)
    def _():
        pool_acc[...] = jnp.zeros_like(pool_acc)

    # Global-average-pool partial sum over this spatial tile (XLU lane reduce).
    pool_acc[...] += jnp.sum(x_ref[...].astype(f32), axis=-1)

    @pl.when(k == pl.num_programs(1) - 1)
    def _():
        pooled = pool_acc[...] * inv_hw                      # (TB, C) f32
        pooled_bf = pooled.astype(bf16)

        # Stand-in backbone features (bf16 MXU operands, f32 accumulate).
        sh = jnp.maximum(
            jnp.dot(pooled_bf, wsh_ref[...], preferred_element_type=f32)
            + bsh_ref[...],
            0.0,
        )                                                    # (TB, SH_FEAT) f32
        rn = jnp.maximum(
            jnp.dot(pooled_bf, wrn_ref[...], preferred_element_type=f32)
            + brn_ref[...],
            0.0,
        )                                                    # (TB, RN_FEAT) f32

        # first_classifier + sigmoid (fully f32: feeds the threshold compare).
        first = jax.nn.sigmoid(
            jnp.dot(sh, wfc_ref[...], preferred_element_type=f32) + bfc_ref[...]
        )                                                    # (TB, 1) f32

        # Per-sample conditional scaling: select on the (TB, 1) score, then a
        # single broadcast multiply over the 512-wide resnet features.
        scale = jnp.where(first < threshold, cond_weight, 1.0)
        rn = rn * scale

        # fc1 over concat([sh, rn]) expressed as a split matmul (no concat).
        h = (
            jnp.dot(sh.astype(bf16), w1s_ref[...], preferred_element_type=f32)
            + jnp.dot(rn.astype(bf16), w1r_ref[...], preferred_element_type=f32)
            + b1_ref[...]
        )
        h = jnp.maximum(h, 0.0)                              # relu (dropout = id)

        # fc2 + relu.
        h = jnp.maximum(
            jnp.dot(h.astype(bf16), w2_ref[...], preferred_element_type=f32)
            + b2_ref[...],
            0.0,
        )                                                    # (TB, DENSE) f32

        # final_classifier + sigmoid (f32; N=1 so VPU-cheap).
        final = jax.nn.sigmoid(
            jnp.dot(h, wf_ref[...], preferred_element_type=f32) + bf_ref[...]
        )                                                    # (TB, 1) f32

        out_ref[:, 0:1] = final.astype(out_ref.dtype)
        out_ref[:, 1:2] = first.astype(out_ref.dtype)


# ---------------------------------------------------------------------------
# Wrapper.
# ---------------------------------------------------------------------------
def prepare_params(params, *, sh_feat):
    """One-time prep: split fc1 at the concat boundary (shufflenet first,
    resnet second, matching torch.cat order) and pre-cast the wide matmul
    weights to bf16.  Biases and the threshold-sensitive classifiers stay f32."""
    (wsh, bsh, wrn, brn, wfc, bfc, w1, b1, w2, b2, wf, bf) = params
    bf16 = jnp.bfloat16
    w1s = w1[:sh_feat]
    w1r = w1[sh_feat:]
    return (
        wsh.astype(bf16), bsh,
        wrn.astype(bf16), brn,
        wfc, bfc,
        w1s.astype(bf16), w1r.astype(bf16), b1,
        w2.astype(bf16), b2,
        wf, bf,
    )


def combined_model_forward(
    x, prepared, *, threshold, cond_weight, batch_tile=128, max_spatial_tile=2048
):
    """x: (B, C, H, W) float32 NCHW.  Returns (final_output, first_output)."""
    B, C, H, W = x.shape
    HW = H * W
    x_flat = x.reshape(B, C, HW)

    (wsh, bsh, wrn, brn, wfc, bfc, w1s, w1r, b1, w2, b2, wf, bf) = prepared
    sh_feat = wsh.shape[1]
    rn_feat = wrn.shape[1]
    filters = w1s.shape[1]
    dense = w2.shape[1]

    # Batch tile (parallel axis) and a spatial tile that is a multiple of 128
    # lanes AND divides H*W exactly (so edge padding never enters the pooled sum).
    tb = min(B, batch_tile)
    if HW % 128 == 0:
        ts = 128
        while ts * 2 <= min(HW, max_spatial_tile) and HW % (ts * 2) == 0:
            ts *= 2
    else:
        ts = HW
    grid = (pl.cdiv(B, tb), HW // ts)

    inputs = (x_flat, wsh, bsh, wrn, brn, wfc, bfc, w1s, w1r, b1, w2, b2, wf, bf)

    def const_map(i, k):        # weights: same block every step -> VMEM-resident
        return (0, 0)

    in_specs = [pl.BlockSpec((tb, C, ts), lambda i, k: (i, 0, k))] + [
        pl.BlockSpec(w.shape, const_map) for w in inputs[1:]
    ]
    out_spec = pl.BlockSpec((tb, 2), lambda i, k: (i, 0))

    kernel = functools.partial(
        _combined_kernel,
        threshold=threshold,
        cond_weight=cond_weight,
        inv_hw=1.0 / HW,
    )

    flops = 2 * B * (
        HW * C                              # pooling adds
        + C * (sh_feat + rn_feat)           # backbone projections
        + sh_feat                           # first_classifier
        + (sh_feat + rn_feat) * filters     # fc1
        + filters * dense                   # fc2
        + dense                             # final_classifier
    )
    bytes_accessed = (
        x_flat.size * x_flat.dtype.itemsize
        + sum(int(a.size) * a.dtype.itemsize for a in inputs[1:])
        + B * 2 * 4
    )
    cost = pl.CostEstimate(
        flops=flops, transcendentals=2 * B, bytes_accessed=bytes_accessed
    )

    out2 = pl.pallas_call(
        kernel,
        out_shape=jax.ShapeDtypeStruct((B, 2), jnp.float32),
        grid_spec=pltpu.PrefetchScalarGridSpec(
            num_scalar_prefetch=0,
            grid=grid,
            in_specs=in_specs,
            out_specs=out_spec,
            scratch_shapes=[pltpu.VMEM((tb, C), jnp.float32)],
        ),
        compiler_params=pltpu.CompilerParams(
            dimension_semantics=("parallel", "arbitrary"),
            vmem_limit_bytes=32 * 1024 * 1024,
        ),
        cost_estimate=cost,
    )(*inputs)

    return out2[:, 0:1], out2[:, 1:2]


# ---------------------------------------------------------------------------
# Pure-JAX reference (same bf16 casts) for a correctness check.
# ---------------------------------------------------------------------------
def reference_forward(x, prepared, *, threshold, cond_weight):
    (wsh, bsh, wrn, brn, wfc, bfc, w1s, w1r, b1, w2, b2, wf, bf) = prepared
    f32, bf16 = jnp.float32, jnp.bfloat16
    B, C, H, W = x.shape
    pooled = jnp.mean(x.reshape(B, C, H * W), axis=-1)
    pooled_bf = pooled.astype(bf16)
    sh = jnp.maximum(jnp.dot(pooled_bf, wsh, preferred_element_type=f32) + bsh, 0.0)
    rn = jnp.maximum(jnp.dot(pooled_bf, wrn, preferred_element_type=f32) + brn, 0.0)
    first = jax.nn.sigmoid(jnp.dot(sh, wfc, preferred_element_type=f32) + bfc)
    rn = rn * jnp.where(first < threshold, cond_weight, 1.0)
    h = jnp.maximum(
        jnp.dot(sh.astype(bf16), w1s, preferred_element_type=f32)
        + jnp.dot(rn.astype(bf16), w1r, preferred_element_type=f32)
        + b1,
        0.0,
    )
    h = jnp.maximum(jnp.dot(h.astype(bf16), w2, preferred_element_type=f32) + b2, 0.0)
    final = jax.nn.sigmoid(jnp.dot(h, wf, preferred_element_type=f32) + bf)
    return final, first


# ---------------------------------------------------------------------------
# Deterministic parameter construction (synthetic, no checkpoint loading).
# ---------------------------------------------------------------------------
def make_params(key, *, channels, sh_feat, rn_feat, filters, dense):
    keys = jax.random.split(key, 12)

    def lin(k, fan_in, fan_out):
        scale = 1.0 / jnp.sqrt(jnp.float32(fan_in))
        return jax.random.uniform(k, (fan_in, fan_out), jnp.float32, -scale, scale)

    wsh = lin(keys[0], channels, sh_feat)
    bsh = 0.01 * jnp.ones((1, sh_feat), jnp.float32)
    wrn = lin(keys[1], channels, rn_feat)
    brn = 0.01 * jnp.ones((1, rn_feat), jnp.float32)
    wfc = lin(keys[2], sh_feat, 1)
    bfc = jnp.zeros((1, 1), jnp.float32)
    w1 = lin(keys[3], sh_feat + rn_feat, filters)
    b1 = jnp.zeros((1, filters), jnp.float32)
    w2 = lin(keys[4], filters, dense)
    b2 = jnp.zeros((1, dense), jnp.float32)
    wf = lin(keys[5], dense, 1)
    bf = jnp.zeros((1, 1), jnp.float32)
    return (wsh, bsh, wrn, brn, wfc, bfc, w1, b1, w2, b2, wf, bf)


if __name__ == "__main__":
    # Small shapes consistent with the module's forward.
    B, C, H, W = 2, 4, 16, 16
    SH_FEAT = 1024        # shufflenet_v2_x1_0 conv5[0].out_channels
    RN_FEAT = 512         # resnet18 num_features
    FILTERS = 32          # hp.filters
    DENSE = 16            # hp.num_dense_units
    THRESHOLD = 0.5       # hp.cond_activation_threshold
    COND_WEIGHT = 0.5     # hp.cond_activation_weight

    key = jax.random.PRNGKey(0)
    kx, kp = jax.random.split(key)
    x = jax.random.normal(kx, (B, C, H, W), jnp.float32)
    params = make_params(
        kp, channels=C, sh_feat=SH_FEAT, rn_feat=RN_FEAT,
        filters=FILTERS, dense=DENSE,
    )
    prepared = prepare_params(params, sh_feat=SH_FEAT)

    # max_spatial_tile=128 -> 2 spatial grid steps: exercises the pooled-sum
    # accumulator / pl.when init+finalize path even at this toy resolution.
    final_out, first_out = combined_model_forward(
        x, prepared, threshold=THRESHOLD, cond_weight=COND_WEIGHT,
        max_spatial_tile=128,
    )
    jax.block_until_ready((final_out, first_out))

    assert final_out.shape == (B, 1) and first_out.shape == (B, 1)

    ref_final, ref_first = reference_forward(
        x, prepared, threshold=THRESHOLD, cond_weight=COND_WEIGHT
    )
    assert jnp.allclose(final_out, ref_final, atol=2e-2, rtol=2e-2)
    assert jnp.allclose(first_out, ref_first, atol=2e-2, rtol=2e-2)

    print("KERNEL_OK")
</pallas_src>

<mosaic_0001>
module attributes {stable_mosaic.version = 11 : i64} {
  func.func @_combined_kernel(%arg0: i32, %arg1: i32, %arg2: memref<2x4x128xf32, #tpu.memory_space<vmem>>, %arg3: memref<4x1024xbf16, #tpu.memory_space<vmem>>, %arg4: memref<1x1024xf32, #tpu.memory_space<vmem>>, %arg5: memref<4x512xbf16, #tpu.memory_space<vmem>>, %arg6: memref<1x512xf32, #tpu.memory_space<vmem>>, %arg7: memref<1024x1xf32, #tpu.memory_space<vmem>>, %arg8: memref<1x1xf32, #tpu.memory_space<vmem>>, %arg9: memref<1024x32xbf16, #tpu.memory_space<vmem>>, %arg10: memref<512x32xbf16, #tpu.memory_space<vmem>>, %arg11: memref<1x32xf32, #tpu.memory_space<vmem>>, %arg12: memref<32x16xbf16, #tpu.memory_space<vmem>>, %arg13: memref<1x16xf32, #tpu.memory_space<vmem>>, %arg14: memref<16x1xf32, #tpu.memory_space<vmem>>, %arg15: memref<1x1xf32, #tpu.memory_space<vmem>>, %arg16: memref<2x2xf32, #tpu.memory_space<vmem>>, %arg17: memref<2x4xf32, #tpu.memory_space<vmem>>) attributes {dimension_semantics = [#tpu.dimension_semantics<parallel>, #tpu.dimension_semantics<arbitrary>], iteration_bounds = array<i64: 1, 2>, scalar_prefetch = 0 : i64, scratch_operands = 1 : i64, tpu.core_type = #tpu.core_type<tc>, window_params = [{transform_indices = @transform_0, window_bounds = array<i64: 2, 4, 128>}, {pipeline_mode = #tpu.pipeline_mode<synchronous>, transform_indices = @transform_1, window_bounds = array<i64: 4, 1024>}, {pipeline_mode = #tpu.pipeline_mode<synchronous>, transform_indices = @transform_2, window_bounds = array<i64: 1, 1024>}, {pipeline_mode = #tpu.pipeline_mode<synchronous>, transform_indices = @transform_3, window_bounds = array<i64: 4, 512>}, {pipeline_mode = #tpu.pipeline_mode<synchronous>, transform_indices = @transform_4, window_bounds = array<i64: 1, 512>}, {pipeline_mode = #tpu.pipeline_mode<synchronous>, transform_indices = @transform_5, window_bounds = array<i64: 1024, 1>}, {pipeline_mode = #tpu.pipeline_mode<synchronous>, transform_indices = @transform_6, window_bounds = array<i64: 1, 1>}, {pipeline_mode = #tpu.pipeline_mode<synchronous>, transform_indices = @transform_7, window_bounds = array<i64: 1024, 32>}, {pipeline_mode = #tpu.pipeline_mode<synchronous>, transform_indices = @transform_8, window_bounds = array<i64: 512, 32>}, {pipeline_mode = #tpu.pipeline_mode<synchronous>, transform_indices = @transform_9, window_bounds = array<i64: 1, 32>}, {pipeline_mode = #tpu.pipeline_mode<synchronous>, transform_indices = @transform_10, window_bounds = array<i64: 32, 16>}, {pipeline_mode = #tpu.pipeline_mode<synchronous>, transform_indices = @transform_11, window_bounds = array<i64: 1, 16>}, {pipeline_mode = #tpu.pipeline_mode<synchronous>, transform_indices = @transform_12, window_bounds = array<i64: 16, 1>}, {pipeline_mode = #tpu.pipeline_mode<synchronous>, transform_indices = @transform_13, window_bounds = array<i64: 1, 1>}, {transform_indices = @transform_14, window_bounds = array<i64: 2, 2>}]} {
    %c0_i32 = arith.constant 0 : i32
    %0 = arith.cmpi eq, %arg1, %c0_i32 : i32
    %1 = arith.extui %0 : i1 to i32
    %c0_i32_0 = arith.constant 0 : i32
    %2 = arith.cmpi ne, %1, %c0_i32_0 : i32
    scf.if %2 {
      %cst_8 = arith.constant 0.000000e+00 : f32
      %11 = vector.broadcast %cst_8 : f32 to vector<2x4xf32>
      %c0_9 = arith.constant 0 : index
      %c0_10 = arith.constant 0 : index
      %12 = vector.load %arg17[%c0_9, %c0_10] : memref<2x4xf32, #tpu.memory_space<vmem>>, vector<2x4xf32>
      tpu.vector_store %arg17[%c0_9, %c0_10], %11 {strides = array<i32>} : memref<2x4xf32, #tpu.memory_space<vmem>>, vector<2x4xf32>,
    } else {
    }
    %c0 = arith.constant 0 : index
    %c0_1 = arith.constant 0 : index
    %3 = vector.load %arg17[%c0, %c0_1] : memref<2x4xf32, #tpu.memory_space<vmem>>, vector<2x4xf32>
    %c0_2 = arith.constant 0 : index
    %c0_3 = arith.constant 0 : index
    %c0_4 = arith.constant 0 : index
    %4 = vector.load %arg2[%c0_2, %c0_3, %c0_4] : memref<2x4x128xf32, #tpu.memory_space<vmem>>, vector<2x4x128xf32>
    %cst = arith.constant dense<0.000000e+00> : vector<2x4xf32>
    %5 = vector.multi_reduction <add>, %4, %cst [2] : vector<2x4x128xf32> to vector<2x4xf32>
    %6 = arith.addf %3, %5 : vector<2x4xf32>
    %c0_5 = arith.constant 0 : index
    %c0_6 = arith.constant 0 : index
    %7 = vector.load %arg17[%c0_5, %c0_6] : memref<2x4xf32, #tpu.memory_space<vmem>>, vector<2x4xf32>
    tpu.vector_store %arg17[%c0_5, %c0_6], %6 {strides = array<i32>} : memref<2x4xf32, #tpu.memory_space<vmem>>, vector<2x4xf32>,
    %c1_i32 = arith.constant 1 : i32
    %8 = arith.cmpi eq, %arg1, %c1_i32 : i32
    %9 = arith.extui %8 : i1 to i32
    %c0_i32_7 = arith.constant 0 : i32
    %10 = arith.cmpi ne, %9, %c0_i32_7 : i32
    scf.if %10 {
      %c0_8 = arith.constant 0 : index
      %c0_9 = arith.constant 0 : index
      %11 = vector.load %arg17[%c0_8, %c0_9] : memref<2x4xf32, #tpu.memory_space<vmem>>, vector<2x4xf32>
      %cst_10 = arith.constant 3.906250e-03 : f32
      %12 = vector.broadcast %cst_10 : f32 to vector<2x4xf32>
      %13 = arith.mulf %11, %12 : vector<2x4xf32>
      %14 = arith.truncf %13 : vector<2x4xf32> to vector<2x4xbf16>
      %c0_11 = arith.constant 0 : index
      %c0_12 = arith.constant 0 : index
      %15 = vector.load %arg3[%c0_11, %c0_12] : memref<4x1024xbf16, #tpu.memory_space<vmem>>, vector<4x1024xbf16>
      %cst_13 = arith.constant dense<0.000000e+00> : vector<2x1024xf32>
      %16 = tpu.matmul %14, %15, %cst_13 {dimension_numbers = #tpu.dot_dimension_numbers<[1], [0], [0], [1], [0, 0, 1, 1], [], []>} : vector<2x4xbf16>, vector<4x1024xbf16>, vector<2x1024xf32> -> vector<2x1024xf32>
      %c0_14 = arith.constant 0 : index
      %c0_15 = arith.constant 0 : index
      %17 = vector.load %arg4[%c0_14, %c0_15] : memref<1x1024xf32, #tpu.memory_space<vmem>>, vector<1x1024xf32>
      %18 = vector.broadcast %17 : vector<1x1024xf32> to vector<2x1024xf32>
      %19 = arith.addf %16, %18 : vector<2x1024xf32>
      %cst_16 = arith.constant 0.000000e+00 : f32
      %20 = vector.broadcast %cst_16 : f32 to vector<2x1024xf32>
      %21 = arith.maximumf %19, %20 : vector<2x1024xf32>
      %c0_17 = arith.constant 0 : index
      %c0_18 = arith.constant 0 : index
      %22 = vector.load %arg5[%c0_17, %c0_18] : memref<4x512xbf16, #tpu.memory_space<vmem>>, vector<4x512xbf16>
      %cst_19 = arith.constant dense<0.000000e+00> : vector<2x512xf32>
      %23 = tpu.matmul %14, %22, %cst_19 {dimension_numbers = #tpu.dot_dimension_numbers<[1], [0], [0], [1], [0, 0, 1, 1], [], []>} : vector<2x4xbf16>, vector<4x512xbf16>, vector<2x512xf32> -> vector<2x512xf32>
      %c0_20 = arith.constant 0 : index
      %c0_21 = arith.constant 0 : index
      %24 = vector.load %arg6[%c0_20, %c0_21] : memref<1x512xf32, #tpu.memory_space<vmem>>, vector<1x512xf32>
      %25 = vector.broadcast %24 : vector<1x512xf32> to vector<2x512xf32>
      %26 = arith.addf %23, %25 : vector<2x512xf32>
      %cst_22 = arith.constant 0.000000e+00 : f32
      %27 = vector.broadcast %cst_22 : f32 to vector<2x512xf32>
      %28 = arith.maximumf %26, %27 : vector<2x512xf32>
      %c0_23 = arith.constant 0 : index
      %c0_24 = arith.constant 0 : index
      %29 = vector.load %arg7[%c0_23, %c0_24] : memref<1024x1xf32, #tpu.memory_space<vmem>>, vector<1024x1xf32>
      %cst_25 = arith.constant dense<0.000000e+00> : vector<2x1xf32>
      %30 = tpu.matmul %21, %29, %cst_25 {dimension_numbers = #tpu.dot_dimension_numbers<[1], [0], [0], [1], [0, 0, 1, 1], [], []>} : vector<2x1024xf32>, vector<1024x1xf32>, vector<2x1xf32> -> vector<2x1xf32>
      %c0_26 = arith.constant 0 : index
      %c0_27 = arith.constant 0 : index
      %31 = vector.load %arg8[%c0_26, %c0_27] : memref<1x1xf32, #tpu.memory_space<vmem>>, vector<1x1xf32>
      %32 = vector.broadcast %31 : vector<1x1xf32> to vector<2x1xf32>
      %33 = arith.addf %30, %32 : vector<2x1xf32>
      %34 = arith.negf %33 : vector<2x1xf32>
      %35 = math.exp %34 : vector<2x1xf32>
      %cst_28 = arith.constant 1.000000e+00 : f32
      %36 = vector.broadcast %cst_28 : f32 to vector<2x1xf32>
      %37 = arith.addf %36, %35 : vector<2x1xf32>
      %38 = arith.divf %36, %37 : vector<2x1xf32>
      %cst_29 = arith.constant 5.000000e-01 : f32
      %39 = vector.broadcast %cst_29 : f32 to vector<2x1xf32>
      %40 = arith.cmpf olt, %38, %39 : vector<2x1xf32>
      %cst_30 = arith.constant 5.000000e-01 : f32
      %cst_31 = arith.constant 1.000000e+00 : f32
      %41 = vector.broadcast %cst_30 : f32 to vector<2x1xf32>
      %42 = vector.broadcast %cst_31 : f32 to vector<2x1xf32>
      %43 = arith.select %40, %41, %42 : vector<2x1xi1>, vector<2x1xf32>
      %44 = vector.broadcast %43 : vector<2x1xf32> to vector<2x512xf32>
      %45 = arith.mulf %28, %44 : vector<2x512xf32>
      %46 = arith.truncf %21 : vector<2x1024xf32> to vector<2x1024xbf16>
      %c0_32 = arith.constant 0 : index
      %c0_33 = arith.constant 0 : index
      %47 = vector.load %arg9[%c0_32, %c0_33] : memref<1024x32xbf16, #tpu.memory_space<vmem>>, vector<1024x32xbf16>
      %cst_34 = arith.constant dense<0.000000e+00> : vector<2x32xf32>
      %48 = tpu.matmul %46, %47, %cst_34 {dimension_numbers = #tpu.dot_dimension_numbers<[1], [0], [0], [1], [0, 0, 1, 1], [], []>} : vector<2x1024xbf16>, vector<1024x32xbf16>, vector<2x32xf32> -> vector<2x32xf32>
      %49 = arith.truncf %45 : vector<2x512xf32> to vector<2x512xbf16>
      %c0_35 = arith.constant 0 : index
      %c0_36 = arith.constant 0 : index
      %50 = vector.load %arg10[%c0_35, %c0_36] : memref<512x32xbf16, #tpu.memory_space<vmem>>, vector<512x32xbf16>
      %cst_37 = arith.constant dense<0.000000e+00> : vector<2x32xf32>
      %51 = tpu.matmul %49, %50, %cst_37 {dimension_numbers = #tpu.dot_dimension_numbers<[1], [0], [0], [1], [0, 0, 1, 1], [], []>} : vector<2x512xbf16>, vector<512x32xbf16>, vector<2x32xf32> -> vector<2x32xf32>
      %52 = arith.addf %48, %51 : vector<2x32xf32>
      %c0_38 = arith.constant 0 : index
      %c0_39 = arith.constant 0 : index
      %53 = vector.load %arg11[%c0_38, %c0_39] : memref<1x32xf32, #tpu.memory_space<vmem>>, vector<1x32xf32>
      %54 = vector.broadcast %53 : vector<1x32xf32> to vector<2x32xf32>
      %55 = arith.addf %52, %54 : vector<2x32xf32>
      %cst_40 = arith.constant 0.000000e+00 : f32
      %56 = vector.broadcast %cst_40 : f32 to vector<2x32xf32>
      %57 = arith.maximumf %55, %56 : vector<2x32xf32>
      %58 = arith.truncf %57 : vector<2x32xf32> to vector<2x32xbf16>
      %c0_41 = arith.constant 0 : index
      %c0_42 = arith.constant 0 : index
      %59 = vector.load %arg12[%c0_41, %c0_42] : memref<32x16xbf16, #tpu.memory_space<vmem>>, vector<32x16xbf16>
      %cst_43 = arith.constant dense<0.000000e+00> : vector<2x16xf32>
      %60 = tpu.matmul %58, %59, %cst_43 {dimension_numbers = #tpu.dot_dimension_numbers<[1], [0], [0], [1], [0, 0, 1, 1], [], []>} : vector<2x32xbf16>, vector<32x16xbf16>, vector<2x16xf32> -> vector<2x16xf32>
      %c0_44 = arith.constant 0 : index
      %c0_45 = arith.constant 0 : index
      %61 = vector.load %arg13[%c0_44, %c0_45] : memref<1x16xf32, #tpu.memory_space<vmem>>, vector<1x16xf32>
      %62 = vector.broadcast %61 : vector<1x16xf32> to vector<2x16xf32>
      %63 = arith.addf %60, %62 : vector<2x16xf32>
      %cst_46 = arith.constant 0.000000e+00 : f32
      %64 = vector.broadcast %cst_46 : f32 to vector<2x16xf32>
      %65 = arith.maximumf %63, %64 : vector<2x16xf32>
      %c0_47 = arith.constant 0 : index
      %c0_48 = arith.constant 0 : index
      %66 = vector.load %arg14[%c0_47, %c0_48] : memref<16x1xf32, #tpu.memory_space<vmem>>, vector<16x1xf32>
      %cst_49 = arith.constant dense<0.000000e+00> : vector<2x1xf32>
      %67 = tpu.matmul %65, %66, %cst_49 {dimension_numbers = #tpu.dot_dimension_numbers<[1], [0], [0], [1], [0, 0, 1, 1], [], []>} : vector<2x16xf32>, vector<16x1xf32>, vector<2x1xf32> -> vector<2x1xf32>
      %c0_50 = arith.constant 0 : index
      %c0_51 = arith.constant 0 : index
      %68 = vector.load %arg15[%c0_50, %c0_51] : memref<1x1xf32, #tpu.memory_space<vmem>>, vector<1x1xf32>
      %69 = vector.broadcast %68 : vector<1x1xf32> to vector<2x1xf32>
      %70 = arith.addf %67, %69 : vector<2x1xf32>
      %71 = arith.negf %70 : vector<2x1xf32>
      %72 = math.exp %71 : vector<2x1xf32>
      %cst_52 = arith.constant 1.000000e+00 : f32
      %73 = vector.broadcast %cst_52 : f32 to vector<2x1xf32>
      %74 = arith.addf %73, %72 : vector<2x1xf32>
      %75 = arith.divf %73, %74 : vector<2x1xf32>
      %c0_53 = arith.constant 0 : index
      %c0_54 = arith.constant 0 : index
      %76 = vector.load %arg16[%c0_53, %c0_54] : memref<2x2xf32, #tpu.memory_space<vmem>>, vector<2x1xf32>
      tpu.vector_store %arg16[%c0_53, %c0_54], %75 {strides = array<i32>} : memref<2x2xf32, #tpu.memory_space<vmem>>, vector<2x1xf32>,
      %c0_55 = arith.constant 0 : index
      %c1 = arith.constant 1 : index
      %77 = vector.load %arg16[%c0_55, %c1] : memref<2x2xf32, #tpu.memory_space<vmem>>, vector<2x1xf32>
      tpu.vector_store %arg16[%c0_55, %c1], %38 {strides = array<i32>} : memref<2x2xf32, #tpu.memory_space<vmem>>, vector<2x1xf32>,
    } else {
    }
    return
  }
  func.func @transform_0(%arg0: i32, %arg1: i32) -> (i32, i32, i32) {
    %c0_i32 = arith.constant 0 : i32
    %c0_i32_0 = arith.constant 0 : i32
    return %arg0, %c0_i32, %arg1 : i32, i32, i32
  }
  func.func @transform_1(%arg0: i32, %arg1: i32) -> (i32, i32) {
    %c0_i32 = arith.constant 0 : i32
    %c0_i32_0 = arith.constant 0 : i32
    %c0_i32_1 = arith.constant 0 : i32
    return %c0_i32, %c0_i32_0 : i32, i32
  }
  func.func @transform_2(%arg0: i32, %arg1: i32) -> (i32, i32) {
    %c0_i32 = arith.constant 0 : i32
    %c0_i32_0 = arith.constant 0 : i32
    %c0_i32_1 = arith.constant 0 : i32
    return %c0_i32, %c0_i32_0 : i32, i32
  }
  func.func @transform_3(%arg0: i32, %arg1: i32) -> (i32, i32) {
    %c0_i32 = arith.constant 0 : i32
    %c0_i32_0 = arith.constant 0 : i32
    %c0_i32_1 = arith.constant 0 : i32
    return %c0_i32, %c0_i32_0 : i32, i32
  }
  func.func @transform_4(%arg0: i32, %arg1: i32) -> (i32, i32) {
    %c0_i32 = arith.constant 0 : i32
    %c0_i32_0 = arith.constant 0 : i32
    %c0_i32_1 = arith.constant 0 : i32
    return %c0_i32, %c0_i32_0 : i32, i32
  }
  func.func @transform_5(%arg0: i32, %arg1: i32) -> (i32, i32) {
    %c0_i32 = arith.constant 0 : i32
    %c0_i32_0 = arith.constant 0 : i32
    %c0_i32_1 = arith.constant 0 : i32
    return %c0_i32, %c0_i32_0 : i32, i32
  }
  func.func @transform_6(%arg0: i32, %arg1: i32) -> (i32, i32) {
    %c0_i32 = arith.constant 0 : i32
    %c0_i32_0 = arith.constant 0 : i32
    %c0_i32_1 = arith.constant 0 : i32
    return %c0_i32, %c0_i32_0 : i32, i32
  }
  func.func @transform_7(%arg0: i32, %arg1: i32) -> (i32, i32) {
    %c0_i32 = arith.constant 0 : i32
    %c0_i32_0 = arith.constant 0 : i32
    %c0_i32_1 = arith.constant 0 : i32
    return %c0_i32, %c0_i32_0 : i32, i32
  }
  func.func @transform_8(%arg0: i32, %arg1: i32) -> (i32, i32) {
    %c0_i32 = arith.constant 0 : i32
    %c0_i32_0 = arith.constant 0 : i32
    %c0_i32_1 = arith.constant 0 : i32
    return %c0_i32, %c0_i32_0 : i32, i32
  }
  func.func @transform_9(%arg0: i32, %arg1: i32) -> (i32, i32) {
    %c0_i32 = arith.constant 0 : i32
    %c0_i32_0 = arith.constant 0 : i32
    %c0_i32_1 = arith.constant 0 : i32
    return %c0_i32, %c0_i32_0 : i32, i32
  }
  func.func @transform_10(%arg0: i32, %arg1: i32) -> (i32, i32) {
    %c0_i32 = arith.constant 0 : i32
    %c0_i32_0 = arith.constant 0 : i32
    %c0_i32_1 = arith.constant 0 : i32
    return %c0_i32, %c0_i32_0 : i32, i32
  }
  func.func @transform_11(%arg0: i32, %arg1: i32) -> (i32, i32) {
    %c0_i32 = arith.constant 0 : i32
    %c0_i32_0 = arith.constant 0 : i32
    %c0_i32_1 = arith.constant 0 : i32
    return %c0_i32, %c0_i32_0 : i32, i32
  }
  func.func @transform_12(%arg0: i32, %arg1: i32) -> (i32, i32) {
    %c0_i32 = arith.constant 0 : i32
    %c0_i32_0 = arith.constant 0 : i32
    %c0_i32_1 = arith.constant 0 : i32
    return %c0_i32, %c0_i32_0 : i32, i32
  }
  func.func @transform_13(%arg0: i32, %arg1: i32) -> (i32, i32) {
    %c0_i32 = arith.constant 0 : i32
    %c0_i32_0 = arith.constant 0 : i32
    %c0_i32_1 = arith.constant 0 : i32
    return %c0_i32, %c0_i32_0 : i32, i32
  }
  func.func @transform_14(%arg0: i32, %arg1: i32) -> (i32, i32) {
    %c0_i32 = arith.constant 0 : i32
    %c0_i32_0 = arith.constant 0 : i32
    return %arg0, %c0_i32 : i32, i32
  }
}

</mosaic_0001>

<bundles_post_ra>
// kernel: tpu_custom_call.1
= control target key start
LH: loop header
LB: loop body
LE: loop exit
PB: predicated region body
PF: predicated region fallthrough
CT: control target
= control target key end

     0   :  { %s4486_s0 = inlined_call_operand.vmem [shape: f32[2,4,256], index: 0, kind: input, shape index: {}]   ;;  %s4487_s1 = inlined_call_operand.vmem [shape: bf16[4,1024], index: 1, kind: input, shape index: {}]   ;;  %s4488_s2 = inlined_call_operand.vmem [shape: f32[1,1024], index: 2, kind: input, shape index: {}]   ;;  %s4489_s3 = inlined_call_operand.vmem [shape: bf16[4,512], index: 3, kind: input, shape index: {}]   ;;  %s4490_s4 = inlined_call_operand.vmem [shape: f32[1,512], index: 4, kind: input, shape index: {}]   ;;  %s4491_s5 = inlined_call_operand.vmem [shape: f32[1024,1], index: 5, kind: input, shape index: {}]   ;;  %s4492_s6 = inlined_call_operand.<no memory space> [shape: f32[1,1], index: 6, kind: input, shape index: {}]   ;;  %s4493_s7 = inlined_call_operand.vmem [shape: bf16[1024,32], index: 7, kind: input, shape index: {}]   ;;  %s4494_s8 = inlined_call_operand.vmem [shape: bf16[512,32], index: 8, kind: input, shape index: {}]   ;;  %s4495_s9 = inlined_call_operand.vmem [shape: f32[1,32], index: 9, kind: input, shape index: {}]   ;;  %s4496_s10 = inlined_call_operand.vmem [shape: bf16[32,16], index: 10, kind: input, shape index: {}]   ;;  %s4497_s11 = inlined_call_operand.vmem [shape: f32[1,16], index: 11, kind: input, shape index: {}]   ;;  %s4498_s12 = inlined_call_operand.vmem [shape: f32[16,1], index: 12, kind: input, shape index: {}]   ;;  %s4499_s14 = inlined_call_operand.hbm [shape: f32[2,2], index: 14, kind: output, shape index: {}]   ;;  %s4500_s13 = inlined_call_operand.<no memory space> [shape: f32[1,1], index: 13, kind: input, shape index: {}]  }
   0x1   :  { %v19_v0 = vstv %s4492_s6  ;;  %v21_v1 = vstv %s4500_s13 }
   0x2   :  { %20 = vst [vmem:[#allocation3] sm:$0x1] %v19_v0  ;;  %22 = vst [vmem:[#allocation4] sm:$0x1] %v21_v1 }
   0x3   :  { %23 = vsyncpa [#allocation7], 0  ;;  %s3562_s17 = smov 0   ;;  %s3564_s18 = smov 0  }
   0x4   :  { %s3566_s19 = smov 0   ;;  %s3568_s20 = smov 0  }
   0x5   :  { %s3570_s21 = smov 0  }
   0x6 LB: > { %s2682_s6 = sadd.s32 4294967295, %s3470_s21   ;;  %s38_s13 = sadd.s32 1, %s3466_s20  ;;  %s3470_s21 = sphi %s3570_s21, %s29_s21   ;;  %s3466_s20 = sphi %s3568_s20, %s4505_s20   ;;  %s3462_s19 = sphi %s3566_s19, %s4504_s19   ;;  %s3458_s18 = sphi %s3564_s18, %s4503_s18   ;;  %s3454_s17 = sphi %s3562_s17, %s4502_s17  }
   0x7   : > { %p39_p0 = scmp.ge.s32.totalorder %s38_s13, 2  ;;  %p57_p1 = scmp.ne.s32.totalorder %s3458_s18, %s3454_s17 }
   0x8   : > { %p58_p2 = scmp.eq.s32.totalorder %s3470_s21, 0  ;;  %s50_s23 = sadd.s32 1, %s3458_s18 }
   0x9   : > { %s4507_s13 = smov (%p39_p0, %s38_s13), 0  ;;  %p2684_p5 = scmp.ge.s32.totalorder %s3470_s21, 2 }
   0xa   : > { %p59_p3 = por %p58_p2, %p57_p1  ;;  %s46_s22 = ssub.s32 %s3466_s20, %s4507_s13 }
   0xb   : > { %p48_p4 = scmp.eq.s32.totalorder %s46_s22, 0  ;;  %421 = sbr.rel (%p2684_p5) target bundleno = 25 (0x19), region = 68 }
   0xd   : > { %s3598_s24 = scalar_select %p48_p4, %s3458_s18, %s50_s23  }
  0x12   : > { %424 = sbr.rel (!%p59_p3) target bundleno = 25 (0x19), region = 72  ;;  %s426_s25 = sand.u32 (%p59_p3), 1, %s3458_s18  }
  0x13   : > { %s2686_s26 = sshll.u32 (%p59_p3), %s3466_s20, 2  ;;  %s2685_s27 = sshll.u32 (%p59_p3), %s426_s25, 3 }
  0x14   : > { %s433_s30 = scalar_lea.vmem (%p59_p3), %s4486_s0, %s2686_s26  ;;  %s428_s15 = scalar_lea.vmem (%p59_p3), [#allocation5], %s2685_s27 }
  0x15   : > { %v449_v2 = vld [vmem:[%s433_s30] sm:$0xf] (%p59_p3)  ;;  %v451_v3 = vld [vmem:[%s433_s30 + $0x8] sm:$0xf] (%p59_p3) }
  0x16   : > { %450 = vst [vmem:[%s428_s15] sm:$0xf] (%p59_p3), %v449_v2  ;;  %452 = vst [vmem:[%s428_s15 + $0x4] sm:$0xf] (%p59_p3), %v451_v3 }
  0x19 PF: > { %p2687_p6 = scmp.ge.s32.totalorder %s3470_s21, 1  ;;  %p478_p7 = scmp.lt.s32.totalorder %s3470_s21, 3 }
  0x1b   : > { %p479_p8 = pnand %p2687_p6, %p478_p7 }
  0x1c   : > { %s485_s16 = sand.u32 (!%p479_p8), 1, %s3454_s17   ;;  %p2689_p9 = scmp.ne.s32.totalorder (!%p479_p8), %s3462_s19, 0 }
  0x1d   : > { %482 = sbr.rel (%p479_p8) target bundleno = 1610 (0x64a), region = 113  ;;  %s2688_s22 = sshll.u32 (!%p479_p8), %s485_s16, 3 }
  0x1e   : > { %s487_s23 = scalar_lea.vmem (!%p479_p8), [#allocation5], %s2688_s22 }
  0x24   : > { %530 = sbr.rel (%p2689_p9) target bundleno = 43 (0x2b), region = 121  ;;  %vm531_vm0 = vcmask (!%p2689_p9), 25600   ;;  %v3472_v4 = vmov (!%p2689_p9), 0.0  }
  0x25   : > { %532 = vst.msk [vmem:[#allocation2] sm:$0x3] (!%p2689_p9), %vm531_vm0, %v3472_v4 }
  0x2b PF: > { %v534_v5 = vld [vmem:[%s487_s23] sm:$0xf]  ;;  %vm536_vm1 = vcmask 1043456   ;;  %v535_v6 = vld [vmem:[%s487_s23 + $0x4] sm:$0xf]  ;;  %v545_v9 = vlaneseq  ;;  %vm555_vm2 = vcmask 1041409  }
  0x2c   : > { %v537_v7 = vsel %vm536_vm1, %v534_v5, 0.0  ;;  %v540_v8 = vsel %vm536_vm1, %v535_v6, 0.0  ;;  %v533_v16 = vld [vmem:[#allocation2] sm:$0x3]  ;;  %vm559_vm3 = vcmask 25600   ;;  %p2690_p10 = scmp.ne.s32.totalorder %s3462_s19, 1 }
  0x2d   : > { %538 = vadd.xlane.f32.xlu0 %v537_v7  ;;  %v546_v10 = vand.u32 127, %v545_v9  ;;  %v3610_v11 = vshrl.u32 %v545_v9, 7  ;;  %v568_v20 = vld [vmem:[%s4487_s1] sm:$0xff] (!%p2690_p10)  ;;  %v3473_v21 = vmov (!%p2690_p10), 1983009808   ;;  %v3474_v23 = vmov (!%p2690_p10), 0  }
  0x2e   : > { %v616_v22 = vunpack.c.l.s4 (!%p2690_p10), %v3473_v21  ;;  %709 = vmatprep.mubr.bf16.mxu0 (!%p2690_p10), %v3474_v23  ;;  %750 = vmatprep.mubr.bf16.mxu1 (!%p2690_p10), %v3474_v23  ;;  %v569_v24 = vld [vmem:[%s4487_s1 + $0x8] sm:$0xff] (!%p2690_p10)  ;;  %v614_v26 = vcombine.high (!%p2690_p10), %v568_v20, %v568_v20  ;;  %v849_v29 = vld [vmem:[%s4489_s3] sm:$0xff] (!%p2690_p10)  ;;  %vm652_vm4 = vcmask (!%p2690_p10), 1041408   ;;  %vm648_vm5 = vcmask (!%p2690_p10), 31744   ;;  %v1006_v62 = vld [vmem:[%s4491_s5 + $0x90] sm:$0xff] (!%p2690_p10)  ;;  %s3476_s22 = smov (!%p2690_p10), 1  }
  0x2f   : > { %v549_v13 = vsub.s32 %v546_v10, %v3610_v11  ;;  %3292 = vset.pattern.permute.xlu0 (!%p2690_p10), %v3474_v23  ;;  %v631_v28 = vcombine.high (!%p2690_p10), %v569_v24, %v569_v24  ;;  %v873_v32 = vcombine.high (!%p2690_p10), %v849_v29, %v849_v29  ;;  %v1004_v50 = vld [vmem:[%s4491_s5 + $0x80] sm:$0xff] (!%p2690_p10)  ;;  %v1005_v51 = vld [vmem:[%s4491_s5 + $0x88] sm:$0xff] (!%p2690_p10)  ;;  %v1007_v63 = vld [vmem:[%s4491_s5 + $0x98] sm:$0xff] (!%p2690_p10)  ;;  %vm3478_vm7 = vmmov (!%p2690_p10), 0  }
  0x30   : > { %v617_v25 = vunpack.c.0.s8 (!%p2690_p10), %v616_v22  ;;  %v1036_v52 = vld [vmem:[%s4491_s5 + $0x180] sm:$0xff] (!%p2690_p10)  ;;  %v1037_v53 = vld [vmem:[%s4491_s5 + $0x188] sm:$0xff] (!%p2690_p10)  ;;  %v3106_v56 = vpack.c.bf16 (!%p2690_p10), %v1005_v51, %v1004_v50  ;;  %v1038_v0 = vld [vmem:[%s4491_s5 + $0x190] sm:$0xff] (!%p2690_p10)  ;;  %vm2473_vm8 = vcmask (!%p2690_p10), 261120   ;;  %vm2527_vm9 = vcmask (!%p2690_p10), 130048  }
  0x31   : > { %541 = vadd.xlane.f32.xlu0 %v540_v8  ;;  %v3138_v57 = vpack.c.bf16 (!%p2690_p10), %v1037_v53, %v1036_v52  ;;  %v988_v58 = vld [vmem:[%s4491_s5] sm:$0xff] (!%p2690_p10)  ;;  %v989_v59 = vld [vmem:[%s4491_s5 + $0x8] sm:$0xff] (!%p2690_p10)  ;;  %v1039_v1 = vld [vmem:[%s4491_s5 + $0x198] sm:$0xff] (!%p2690_p10)  ;;  %vm2607_vm10 = vcmask (!%p2690_p10), 1024   ;;  %vm2613_vm11 = vcmask (!%p2690_p10), 9224  }
  0x32   : > { %v620_v30 = vsub.s32 (!%p2690_p10), %v617_v25, %v3610_v11  ;;  %v1020_v60 = vld [vmem:[%s4491_s5 + $0x100] sm:$0xff] (!%p2690_p10)  ;;  %v1021_v61 = vld [vmem:[%s4491_s5 + $0x108] sm:$0xff] (!%p2690_p10)  ;;  %v990_v2 = vld [vmem:[%s4491_s5 + $0x10] sm:$0xff] (!%p2690_p10)  ;;  %v3108_v6 = vpack.c.bf16 (!%p2690_p10), %v989_v59, %v988_v58 }
  0x33   : > { %v991_v3 = vld [vmem:[%s4491_s5 + $0x18] sm:$0xff] (!%p2690_p10)  ;;  %v1022_v4 = vld [vmem:[%s4491_s5 + $0x110] sm:$0xff] (!%p2690_p10)  ;;  %v3140_v7 = vpack.c.bf16 (!%p2690_p10), %v1021_v61, %v1020_v60  ;;  %v1008_v8 = vld [vmem:[%s4491_s5 + $0xa0] sm:$0xff] (!%p2690_p10) }
  0x34   : > { %v621_v33 = vrot.slane (!%p2690_p10), %v568_v20, %v620_v30  ;;  %v628_v34 = vrot.slane (!%p2690_p10), %v614_v26, %v620_v30  ;;  %v638_v35 = vrot.slane (!%p2690_p10), %v569_v24, %v620_v30  ;;  %v645_v36 = vrot.slane (!%p2690_p10), %v631_v28, %v620_v30  ;;  %v1023_v5 = vld [vmem:[%s4491_s5 + $0x118] sm:$0xff] (!%p2690_p10)  ;;  %v1009_v9 = vld [vmem:[%s4491_s5 + $0xa8] sm:$0xff] (!%p2690_p10)  ;;  %v1040_v10 = vld [vmem:[%s4491_s5 + $0x1a0] sm:$0xff] (!%p2690_p10) }
  0x35   : > { %v880_v43 = vrot.slane (!%p2690_p10), %v849_v29, %v620_v30  ;;  %v887_v44 = vrot.slane (!%p2690_p10), %v873_v32, %v620_v30  ;;  %v3144_v20 = vpack.c.bf16 (!%p2690_p10), %v1023_v5, %v1022_v4  ;;  %v1010_v21 = vld [vmem:[%s4491_s5 + $0xb0] sm:$0xff] (!%p2690_p10)  ;;  %v1011_v22 = vld [vmem:[%s4491_s5 + $0xb8] sm:$0xff] (!%p2690_p10)  ;;  %v3114_v25 = vpack.c.bf16 (!%p2690_p10), %v1009_v9, %v1008_v8  ;;  %v1017_v58 = vld [vmem:[%s4491_s5 + $0xe8] sm:$0xff] (!%p2690_p10) }
  0x36   : > { %v629_v37 = vcombine.high (!%p2690_p10), %v621_v33, %v621_v33  ;;  %v630_v38 = vcombine.high (!%p2690_p10), %v628_v34, %v628_v34  ;;  %v654_v39 = vsel (!%p2690_p10), %vm652_vm4, %v621_v33, 0  ;;  %v660_v40 = vsel (!%p2690_p10), %vm652_vm4, %v628_v34, 0  ;;  %v1043_v24 = vld [vmem:[%s4491_s5 + $0x1b8] sm:$0xff] (!%p2690_p10)  ;;  %v1026_v29 = vld [vmem:[%s4491_s5 + $0x130] sm:$0xff] (!%p2690_p10)  ;;  %v1012_v33 = vld [vmem:[%s4491_s5 + $0xc0] sm:$0xff] (!%p2690_p10) }
  0x37   : > { %v646_v41 = vcombine.high (!%p2690_p10), %v638_v35, %v638_v35  ;;  %v647_v42 = vcombine.high (!%p2690_p10), %v645_v36, %v645_v36  ;;  %v666_v46 = vsel (!%p2690_p10), %vm652_vm4, %v638_v35, 0  ;;  %v672_v47 = vsel (!%p2690_p10), %vm652_vm4, %v645_v36, 0  ;;  %v995_v28 = vld [vmem:[%s4491_s5 + $0x38] sm:$0xff] (!%p2690_p10)  ;;  %v1013_v34 = vld [vmem:[%s4491_s5 + $0xc8] sm:$0xff] (!%p2690_p10)  ;;  %v1044_v35 = vld [vmem:[%s4491_s5 + $0x1c0] sm:$0xff] (!%p2690_p10) }
  0x38   : > { %2691 = vmatprep.subr.msk.bf16.mxu0 (!%p2690_p10), %vm652_vm4, %v629_v37  ;;  %2693 = vmatprep.subr.msk.bf16.mxu1 (!%p2690_p10), %vm652_vm4, %v630_v38  ;;  %v888_v48 = vcombine.high (!%p2690_p10), %v880_v43, %v880_v43  ;;  %v889_v49 = vcombine.high (!%p2690_p10), %v887_v44, %v887_v44  ;;  %v891_v54 = vsel (!%p2690_p10), %vm652_vm4, %v880_v43, 0  ;;  %v897_v55 = vsel (!%p2690_p10), %vm652_vm4, %v887_v44, 0  ;;  %v1027_v30 = vld [vmem:[%s4491_s5 + $0x138] sm:$0xff] (!%p2690_p10)  ;;  %v1045_v36 = vld [vmem:[%s4491_s5 + $0x1c8] sm:$0xff] (!%p2690_p10)  ;;  %v998_v51 = vld [vmem:[%s4491_s5 + $0x50] sm:$0xff] (!%p2690_p10) }
  0x39   : > { %678 = vmatpush1.bf16.msra.mxu0 (!%p2690_p10), %v654_v39  ;;  %719 = vmatpush1.bf16.msra.mxu1 (!%p2690_p10), %v660_v40  ;;  %v3118_v37 = vpack.c.bf16 (!%p2690_p10), %v1011_v22, %v1010_v21  ;;  %v996_v39 = vld [vmem:[%s4491_s5 + $0x40] sm:$0xff] (!%p2690_p10)  ;;  %v997_v40 = vld [vmem:[%s4491_s5 + $0x48] sm:$0xff] (!%p2690_p10)  ;;  %v3152_v44 = vpack.c.bf16 (!%p2690_p10), %v1027_v30, %v1026_v29  ;;  %v3154_v50 = vpack.c.bf16 (!%p2690_p10), %v1045_v36, %v1044_v35  ;;  %v999_v52 = vld [vmem:[%s4491_s5 + $0x58] sm:$0xff] (!%p2690_p10)  ;;  %v582_v29 = vsub.s32 (!%p2690_p10), 2, %v3610_v11 }
  0x3a   : > { %2695 = vmatprep.subr.msk.bf16.mxu0 (!%p2690_p10), %vm652_vm4, %v646_v41  ;;  %2697 = vmatprep.subr.msk.bf16.mxu1 (!%p2690_p10), %vm652_vm4, %v647_v42  ;;  %v1028_v41 = vld [vmem:[%s4491_s5 + $0x140] sm:$0xff] (!%p2690_p10)  ;;  %v1029_v42 = vld [vmem:[%s4491_s5 + $0x148] sm:$0xff] (!%p2690_p10)  ;;  %v1030_v53 = vld [vmem:[%s4491_s5 + $0x150] sm:$0xff] (!%p2690_p10) }
  0x3b   : > { %v1048_v59 = vld [vmem:[%s4491_s5 + $0x1e0] sm:$0xff] (!%p2690_p10)  ;;  %v1049_v60 = vld [vmem:[%s4491_s5 + $0x1e8] sm:$0xff] (!%p2690_p10)  ;;  %v1018_v9 = vld [vmem:[%s4491_s5 + $0xf0] sm:$0xff] (!%p2690_p10) }
  0x3c   : > { %v1068_v22 = vld [vmem:[%s4491_s5 + $0x280] sm:$0xff] (!%p2690_p10) }
  0x3d   : > { %v3858_v30 = vld [vmem:[%s4488_s2] sm:$0xff] (!%p2690_p10) }
  0xba   : > { %v539_v12 = vpop.xlane.xlu0 %538 }
  0xbb   : > { %v550_v15 = vrot.slane %v539_v12, %v549_v13  ;;  %v1041_v12 = vld [vmem:[%s4491_s5 + $0x1a8] sm:$0xff] (!%p2690_p10) }
  0xbc   : > { %v3146_v26 = vpack.c.bf16 (!%p2690_p10), %v1041_v12, %v1040_v10  ;;  %v1019_v10 = vld [vmem:[%s4491_s5 + $0xf8] sm:$0xff] (!%p2690_p10)  ;;  %v1050_v12 = vld [vmem:[%s4491_s5 + $0x1f0] sm:$0xff] (!%p2690_p10) }
  0xbe   : > { %v542_v14 = vpop.xlane.xlu0 %541  ;;  %564 = sbr.rel (%p2690_p10) target bundleno = 1585 (0x631), region = 125 }
  0xbf   : > { %v554_v17 = vrot.slane %v542_v14, %v549_v13  ;;  %v3110_v13 = vpack.c.bf16 (!%p2690_p10), %v1007_v63, %v1006_v62  ;;  %v3142_v14 = vpack.c.bf16 (!%p2690_p10), %v1039_v1, %v1038_v0  ;;  %v1000_v63 = vld [vmem:[%s4491_s5 + $0x60] sm:$0xff] (!%p2690_p10)  ;;  %v1001_v0 = vld [vmem:[%s4491_s5 + $0x68] sm:$0xff] (!%p2690_p10) }
  0xc0   : > { %v1032_v1 = vld [vmem:[%s4491_s5 + $0x160] sm:$0xff] (!%p2690_p10) }
  0xc1   : > { %v556_v18 = vsel %vm555_vm2, %v554_v17, %v550_v15  ;;  %v992_v15 = vld [vmem:[%s4491_s5 + $0x20] sm:$0xff] (!%p2690_p10) }
  0xc2   : > { %v558_v19 = vadd.f32 %v556_v18, %v533_v16  ;;  %v993_v16 = vld [vmem:[%s4491_s5 + $0x28] sm:$0xff] (!%p2690_p10)  ;;  %v1024_v17 = vld [vmem:[%s4491_s5 + $0x120] sm:$0xff] (!%p2690_p10) }
  0xc3   : > { %v1025_v18 = vld [vmem:[%s4491_s5 + $0x128] sm:$0xff] (!%p2690_p10) }
  0xc4   : > { %560 = vst.msk [vmem:[#allocation2] sm:$0x3] %vm559_vm3, %v558_v19  ;;  %v3112_v19 = vpack.c.bf16 (!%p2690_p10), %v991_v3, %v990_v2  ;;  %v3148_v32 = vpack.c.bf16 (!%p2690_p10), %v1025_v18, %v1024_v17  ;;  %v1033_v2 = vld [vmem:[%s4491_s5 + $0x168] sm:$0xff] (!%p2690_p10)  ;;  %v3128_v3 = vpack.c.bf16 (!%p2690_p10), %v999_v52, %v998_v51 }
  0xc5   : > { %v3164_v8 = vpack.c.bf16 %v1033_v2, %v1032_v1  ;;  %v1055_v1 = vld [vmem:[%s4491_s5 + $0x218] sm:$0xff] }
  0xcb   : > { %v565_v27 = vld [vmem:[#allocation2] sm:$0x3] }
  0xcc   : > { %v566_v31 = vmul.f32 0.00390625, %v565_v27  ;;  %v994_v27 = vld [vmem:[%s4491_s5 + $0x30] sm:$0xff] }
  0xcd   : > { %v3120_v43 = vpack.c.bf16 %v995_v28, %v994_v27  ;;  %v574_v28 = vsub.s32 0, %v3610_v11 }
  0xce   : > { %v567_v45 = vpack.c.bf16 %v566_v31, %v566_v31  ;;  %v3116_v31 = vpack.c.bf16 %v993_v16, %v992_v15  ;;  %v1002_v15 = vld [vmem:[%s4491_s5 + $0x70] sm:$0xff]  ;;  %v1003_v16 = vld [vmem:[%s4491_s5 + $0x78] sm:$0xff] }
  0xcf   : > { %v3136_v18 = vpack.c.bf16 %v1003_v16, %v1002_v15  ;;  %v1056_v16 = vld [vmem:[%s4491_s5 + $0x220] sm:$0xff] }
  0xd0   : > { %2692 = vmatmul.mubr.msk.bf16.vlgmr.msra.gmra.mrb[0].mxu0 %vm648_vm5, %v567_v45  ;;  %2694 = vmatmul.mubr.msk.bf16.vlgmr.msra.gmra.mrb[0].mxu1 %vm648_vm5, %v567_v45 }
  0xd1   : > { %760 = vmatpush1.bf16.msra.mxu0 %v666_v46  ;;  %801 = vmatpush1.bf16.msra.mxu1 %v672_v47  ;;  %v1015_v46 = vld [vmem:[%s4491_s5 + $0xd8] sm:$0xff]  ;;  %v1046_v47 = vld [vmem:[%s4491_s5 + $0x1d0] sm:$0xff] }
  0xd2   : > { %791 = vmatprep.mubr.bf16.mxu0 %v3474_v23  ;;  %832 = vmatprep.mubr.bf16.mxu1 %v3474_v23 }
  0xd3   : > { %2699 = vmatprep.subr.msk.bf16.mxu0 %vm652_vm4, %v888_v48  ;;  %2701 = vmatprep.subr.msk.bf16.mxu1 %vm652_vm4, %v889_v49  ;;  %v1047_v48 = vld [vmem:[%s4491_s5 + $0x1d8] sm:$0xff]  ;;  %v3122_v49 = vpack.c.bf16 %v1013_v34, %v1012_v33  ;;  %v575_v33 = vrot.slane %v3858_v30, %v574_v28  ;;  %v583_v34 = vrot.slane %v3858_v30, %v582_v29 }
  0xd4   : > { %v3158_v62 = vpack.c.bf16 %v1047_v48, %v1046_v47  ;;  %v1070_v47 = vld [vmem:[%s4491_s5 + $0x290] sm:$0xff]  ;;  %v1071_v48 = vld [vmem:[%s4491_s5 + $0x298] sm:$0xff] }
  0xd8   : > { %2696 = vmatmul.mubr.msk.bf16.vlgmr.msra.gmra.mrb[4].mxu0 %vm648_vm5, %v567_v45  ;;  %2698 = vmatmul.mubr.msk.bf16.vlgmr.msra.gmra.mrb[4].mxu1 %vm648_vm5, %v567_v45 }
  0xd9   : > { %903 = vmatpush1.bf16.msra.mxu0 %v891_v54  ;;  %944 = vmatpush1.bf16.msra.mxu1 %v897_v55  ;;  %v1031_v54 = vld [vmem:[%s4491_s5 + $0x158] sm:$0xff]  ;;  %v3124_v55 = vpack.c.bf16 %v997_v40, %v996_v39  ;;  %v1052_v39 = vld [vmem:[%s4491_s5 + $0x200] sm:$0xff]  ;;  %v1053_v40 = vld [vmem:[%s4491_s5 + $0x208] sm:$0xff] }
  0xda   : > { %934 = vmatprep.mubr.bf16.mxu0 %v3474_v23  ;;  %975 = vmatprep.mubr.bf16.mxu1 %v3474_v23  ;;  %v1042_v23 = vld [vmem:[%s4491_s5 + $0x1b0] sm:$0xff]  ;;  %v3160_v4 = vpack.c.bf16 %v1031_v54, %v1030_v53  ;;  %v1103_v54 = vld [vmem:[%s4491_s5 + $0x398] sm:$0xff] }
  0xdb   : > { %3107 = vmatprep.subr.bf16.mxu0 %v3106_v56  ;;  %3139 = vmatprep.subr.bf16.mxu1 %v3138_v57  ;;  %v3150_v38 = vpack.c.bf16 %v1043_v24, %v1042_v23  ;;  %v3156_v56 = vpack.c.bf16 %v1029_v42, %v1028_v41  ;;  %v1016_v57 = vld [vmem:[%s4491_s5 + $0xe0] sm:$0xff]  ;;  %v1069_v23 = vld [vmem:[%s4491_s5 + $0x288] sm:$0xff]  ;;  %v1102_v53 = vld [vmem:[%s4491_s5 + $0x390] sm:$0xff] }
  0xdc   : > { %v3130_v5 = vpack.c.bf16 %v1017_v58, %v1016_v57  ;;  %v1100_v24 = vld [vmem:[%s4491_s5 + $0x380] sm:$0xff] }
  0xdd   : > { %v1084_v41 = vld [vmem:[%s4491_s5 + $0x300] sm:$0xff] }
  0xe0   : > { %2700 = vmatmul.mubr.msk.bf16.vlgmr.msra.gmra.mrb[8].mxu0 %vm648_vm5, %v567_v45  ;;  %2702 = vmatmul.mubr.msk.bf16.vlgmr.msra.gmra.mrb[8].mxu1 %vm648_vm5, %v567_v45  ;;  %v1014_v45 = vld [vmem:[%s4491_s5 + $0xd0] sm:$0xff] }
  0xe1   : > { %3109 = vmatpush3.bf16.msra.mxu0 %v3108_v6  ;;  %3141 = vmatpush3.bf16.msra.mxu1 %v3140_v7  ;;  %v3126_v61 = vpack.c.bf16 %v1015_v46, %v1014_v45  ;;  %v3162_v6 = vpack.c.bf16 %v1049_v60, %v1048_v59  ;;  %v3132_v7 = vpack.c.bf16 %v1001_v0, %v1000_v63  ;;  %v1085_v46 = vld [vmem:[%s4491_s5 + $0x308] sm:$0xff]  ;;  %v1054_v0 = vld [vmem:[%s4491_s5 + $0x210] sm:$0xff] }
  0xe2   : > { %3111 = vmatprep.subr.bf16.mxu0 %v3110_v13  ;;  %3143 = vmatprep.subr.bf16.mxu1 %v3142_v14  ;;  %v3134_v13 = vpack.c.bf16 %v1019_v10, %v1018_v9  ;;  %v1051_v14 = vld [vmem:[%s4491_s5 + $0x1f8] sm:$0xff]  ;;  %v3204_v63 = vpack.c.bf16 %v1085_v46, %v1084_v41  ;;  %v1104_v9 = vld [vmem:[%s4491_s5 + $0x3a0] sm:$0xff]  ;;  %v1105_v10 = vld [vmem:[%s4491_s5 + $0x3a8] sm:$0xff] }
  0xe3   : > { %v3166_v17 = vpack.c.bf16 %v1051_v14, %v1050_v12  ;;  %v3176_v14 = vpack.c.bf16 %v1055_v1, %v1054_v0  ;;  %v3969_v41 = vld [vmem:[%s4490_s4] sm:$0xf]  ;;  %v1061_v0 = vld [vmem:[%s4491_s5 + $0x248] sm:$0xff] }
  0xe5   : > { %3113 = vmatpush3.bf16.msra.mxu0 %v3112_v19  ;;  %3145 = vmatpush3.bf16.msra.mxu1 %v3144_v20  ;;  %v1034_v19 = vld [vmem:[%s4491_s5 + $0x170] sm:$0xff]  ;;  %v1035_v20 = vld [vmem:[%s4491_s5 + $0x178] sm:$0xff] }
  0xe6   : > { %3115 = vmatprep.subr.bf16.mxu0 %v3114_v25  ;;  %3147 = vmatprep.subr.bf16.mxu1 %v3146_v26  ;;  %v3168_v21 = vpack.c.bf16 %v1035_v20, %v1034_v19  ;;  %v3170_v25 = vpack.c.bf16 %v1069_v23, %v1068_v22  ;;  %v1101_v26 = vld [vmem:[%s4491_s5 + $0x388] sm:$0xff]  ;;  %v1088_v22 = vld [vmem:[%s4491_s5 + $0x320] sm:$0xff] }
  0xe7   : > { %v3202_v27 = vpack.c.bf16 %v1101_v26, %v1100_v24  ;;  %v1089_v23 = vld [vmem:[%s4491_s5 + $0x328] sm:$0xff]  ;;  %v1074_v24 = vld [vmem:[%s4491_s5 + $0x2b0] sm:$0xff] }
  0xe9   : > { %3117 = vmatpush3.bf16.msra.mxu0 %v3116_v31  ;;  %3149 = vmatpush3.bf16.msra.mxu1 %v3148_v32  ;;  %v578_v31 = vsub.s32 1, %v3610_v11  ;;  %v586_v32 = vsub.s32 3, %v3610_v11 }
  0xea   : > { %3119 = vmatprep.subr.bf16.mxu0 %v3118_v37  ;;  %3151 = vmatprep.subr.bf16.mxu1 %v3150_v38 }
  0xeb   : > { %v579_v35 = vrot.slane %v3858_v30, %v578_v31  ;;  %v587_v36 = vrot.slane %v3858_v30, %v586_v32 }
  0xed   : > { %3121 = vmatpush3.bf16.msra.mxu0 %v3120_v43  ;;  %3153 = vmatpush3.bf16.msra.mxu1 %v3152_v44 }
  0xee   : > { %3123 = vmatprep.subr.bf16.mxu0 %v3122_v49  ;;  %3155 = vmatprep.subr.bf16.mxu1 %v3154_v50 }
  0xf1   : > { %3125 = vmatpush3.bf16.msra.mxu0 %v3124_v55  ;;  %3157 = vmatpush3.bf16.msra.mxu1 %v3156_v56  ;;  %v594_v55 = vsub.s32 5, %v3610_v11  ;;  %v602_v56 = vsub.s32 7, %v3610_v11 }
  0xf2   : > { %3127 = vmatprep.subr.bf16.mxu0 %v3126_v61  ;;  %3159 = vmatprep.subr.bf16.mxu1 %v3158_v62  ;;  %v3172_v62 = vpack.c.bf16 %v1053_v40, %v1052_v39 }
  0xf3   : > { %v595_v12 = vrot.slane %v3858_v30, %v594_v55  ;;  %v1108_v55 = vld [vmem:[%s4491_s5 + $0x3c0] sm:$0xff] }
  0xf5   : > { %3129 = vmatpush3.bf16.msra.mxu0 %v3128_v3  ;;  %3161 = vmatpush3.bf16.msra.mxu1 %v3160_v4  ;;  %v3174_v3 = vpack.c.bf16 %v1071_v48, %v1070_v47  ;;  %v3206_v4 = vpack.c.bf16 %v1103_v54, %v1102_v53  ;;  %v863_v53 = vrot.slane %v3969_v41, %v582_v29  ;;  %v1077_v54 = vld [vmem:[%s4491_s5 + $0x2c8] sm:$0xff] }
  0xf6   : > { %3131 = vmatprep.subr.bf16.mxu0 %v3130_v5  ;;  %3163 = vmatprep.subr.bf16.mxu1 %v3162_v6  ;;  %v1086_v5 = vld [vmem:[%s4491_s5 + $0x310] sm:$0xff]  ;;  %v1087_v6 = vld [vmem:[%s4491_s5 + $0x318] sm:$0xff]  ;;  %v859_v29 = vrot.slane %v3969_v41, %v578_v31 }
  0xf7   : > { %v3208_v15 = vpack.c.bf16 %v1087_v6, %v1086_v5  ;;  %v1093_v5 = vld [vmem:[%s4491_s5 + $0x348] sm:$0xff]  ;;  %v1078_v6 = vld [vmem:[%s4491_s5 + $0x2d0] sm:$0xff] }
  0xf9   : > { %3133 = vmatpush3.bf16.msra.mxu0 %v3132_v7  ;;  %3165 = vmatpush3.bf16.msra.mxu1 %v3164_v8  ;;  %v1072_v7 = vld [vmem:[%s4491_s5 + $0x2a0] sm:$0xff]  ;;  %v1073_v8 = vld [vmem:[%s4491_s5 + $0x2a8] sm:$0xff] }
  0xfa   : > { %3135 = vmatprep.subr.bf16.mxu0 %v3134_v13  ;;  %3167 = vmatprep.subr.bf16.mxu1 %v3166_v17  ;;  %v603_v13 = vrot.slane %v3858_v30, %v602_v56  ;;  %v1057_v17 = vld [vmem:[%s4491_s5 + $0x228] sm:$0xff]  ;;  %v3178_v20 = vpack.c.bf16 %v1073_v8, %v1072_v7 }
  0xfb   : > { %v1109_v56 = vld [vmem:[%s4491_s5 + $0x3c8] sm:$0xff] }
  0xfd   : > { %3137 = vmatpush3.bf16.msra.mxu0 %v3136_v18  ;;  %3169 = vmatpush3.bf16.msra.mxu1 %v3168_v21  ;;  %v3210_v21 = vpack.c.bf16 %v1105_v10, %v1104_v9  ;;  %v1079_v10 = vld [vmem:[%s4491_s5 + $0x2d8] sm:$0xff] }
  0xfe   : > { %3171 = vmatprep.subr.bf16.mxu0 %v3170_v25  ;;  %3203 = vmatprep.subr.bf16.mxu1 %v3202_v27  ;;  %v1075_v27 = vld [vmem:[%s4491_s5 + $0x2b8] sm:$0xff] }
  0xff   : > { %v3182_v48 = vpack.c.bf16 %v1075_v27, %v1074_v24  ;;  %v1062_v24 = vld [vmem:[%s4491_s5 + $0x250] sm:$0xff] }
 0x1a3   : > { %v711_v37 = vpop.f32.mrb[0].mxu0  ;;  %v752_v38 = vpop.f32.mrb[0].mxu1 }
 0x1a4   : > { %v712_v42 = vadd.f32 %v711_v37, %v575_v33  ;;  %v753_v43 = vadd.f32 %v752_v38, %v583_v34  ;;  %v713_v44 = vpop.f32.mrb[1].mxu0  ;;  %v754_v45 = vpop.f32.mrb[1].mxu1  ;;  %v1106_v33 = vld [vmem:[%s4491_s5 + $0x3b0] sm:$0xff]  ;;  %v1107_v34 = vld [vmem:[%s4491_s5 + $0x3b8] sm:$0xff] }
 0x1a5   : > { %v714_v49 = vadd.f32 %v713_v44, %v579_v35  ;;  %v755_v50 = vadd.f32 %v754_v45, %v587_v36  ;;  %v715_v51 = vpop.f32.mrb[2].mxu0  ;;  %v756_v52 = vpop.f32.mrb[2].mxu1  ;;  %v1058_v44 = vld [vmem:[%s4491_s5 + $0x230] sm:$0xff]  ;;  %v1059_v45 = vld [vmem:[%s4491_s5 + $0x238] sm:$0xff] }
 0x1a6   : > { %v3900_v57 = vmax.f32 %v753_v43, 0.0  ;;  %v716_v58 = vpop.f32.mrb[3].mxu0  ;;  %v757_v59 = vpop.f32.mrb[3].mxu1  ;;  %v3912_v2 = vmax.f32 %v712_v42, 0.0  ;;  %v3180_v42 = vpack.c.bf16 %v1057_v17, %v1056_v16  ;;  %v3212_v43 = vpack.c.bf16 %v1089_v23, %v1088_v22  ;;  %v1091_v51 = vld [vmem:[%s4491_s5 + $0x338] sm:$0xff]  ;;  %v1076_v52 = vld [vmem:[%s4491_s5 + $0x2c0] sm:$0xff] }
 0x1a7   : > { %v3902_v60 = vmax.f32 %v714_v49, 0.0  ;;  %v3904_v61 = vmax.f32 %v755_v50, 0.0  ;;  %v3214_v49 = vpack.c.bf16 %v1107_v34, %v1106_v33  ;;  %v1090_v50 = vld [vmem:[%s4491_s5 + $0x330] sm:$0xff]  ;;  %v867_v58 = vrot.slane %v3969_v41, %v586_v32  ;;  %v1092_v32 = vld [vmem:[%s4491_s5 + $0x340] sm:$0xff]  ;;  %v1095_v34 = vld [vmem:[%s4491_s5 + $0x358] sm:$0xff] }
 0x1a8   : > { %v3184_v59 = vpack.c.bf16 %v1059_v45, %v1058_v44  ;;  %v3186_v31 = vpack.c.bf16 %v1077_v54, %v1076_v52  ;;  %v3220_v23 = vpack.c.bf16 %v1093_v5, %v1092_v32  ;;  %v1094_v33 = vld [vmem:[%s4491_s5 + $0x350] sm:$0xff]  ;;  %v1065_v44 = vld [vmem:[%s4491_s5 + $0x268] sm:$0xff]  ;;  %v590_v45 = vsub.s32 4, %v3610_v11 }
 0x1a9   : > { %1187 = vmatprep.mubr.f32.mxu0 %v3902_v60  ;;  %1257 = vmatprep.mubr.f32.mxu1 %v3904_v61  ;;  %v1082_v52 = vld [vmem:[%s4491_s5 + $0x2f0] sm:$0xff] }
 0x1aa   : > { %1188 = vmatmul.mubr.f32.vlgmr.msra.gmra.mrb[12].mxu0 %v3912_v2  ;;  %1258 = vmatmul.mubr.f32.vlgmr.msra.gmra.mrb[12].mxu1 %v3900_v57  ;;  %v1114_v54 = vld [vmem:[%s4491_s5 + $0x3f0] sm:$0xff] }
 0x1ab   : > { %3173 = vmatpush3.bf16.msra.mxu0 %v3172_v62  ;;  %3205 = vmatpush3.bf16.msra.mxu1 %v3204_v63  ;;  %v3944_v18 = vpop.f32.mrb[4].mxu0  ;;  %v3946_v19 = vpop.f32.mrb[4].mxu1  ;;  %v3216_v62 = vpack.c.bf16 %v1091_v51, %v1090_v50  ;;  %v1060_v63 = vld [vmem:[%s4491_s5 + $0x240] sm:$0xff]  ;;  %v1097_v51 = vld [vmem:[%s4491_s5 + $0x368] sm:$0xff] }
 0x1ac   : > { %3175 = vmatprep.subr.bf16.mxu0 %v3174_v3  ;;  %3207 = vmatprep.subr.bf16.mxu1 %v3206_v4  ;;  %v795_v25 = vpop.f32.mrb[5].mxu0  ;;  %v836_v26 = vpop.f32.mrb[5].mxu1  ;;  %v3218_v4 = vpack.c.bf16 %v1109_v56, %v1108_v55  ;;  %v3188_v22 = vpack.c.bf16 %v1061_v0, %v1060_v63  ;;  %v1096_v50 = vld [vmem:[%s4491_s5 + $0x360] sm:$0xff]  ;;  %v1115_v55 = vld [vmem:[%s4491_s5 + $0x3f8] sm:$0xff] }
 0x1ad   : > { %v796_v35 = vadd.f32 %v795_v25, %v595_v12  ;;  %v797_v36 = vpop.f32.mrb[6].mxu0  ;;  %v837_v37 = vadd.f32 %v836_v26, %v603_v13  ;;  %v838_v38 = vpop.f32.mrb[6].mxu1  ;;  %v1110_v12 = vld [vmem:[%s4491_s5 + $0x3d0] sm:$0xff]  ;;  %v1111_v13 = vld [vmem:[%s4491_s5 + $0x3d8] sm:$0xff]  ;;  %v3190_v26 = vpack.c.bf16 %v1079_v10, %v1078_v6  ;;  %v3230_v0 = vpack.c.bf16 %v1115_v55, %v1114_v54  ;;  %v3298_v10 = vld [vmem:[%s4494_s8] sm:$0xff]  }
 0x1ae   : > { %v798_v39 = vpop.f32.mrb[7].mxu0  ;;  %v839_v40 = vpop.f32.mrb[7].mxu1  ;;  %v1063_v25 = vld [vmem:[%s4491_s5 + $0x258] sm:$0xff]  ;;  %v3222_v27 = vpack.c.bf16 %v1111_v13, %v1110_v12  ;;  %v1081_v36 = vld [vmem:[%s4491_s5 + $0x2e8] sm:$0xff]  ;;  %v3299_v12 = vld [vmem:[%s4494_s8 + $0x80] sm:$0xff]  }
 0x1af   : > { %3177 = vmatpush3.bf16.msra.mxu0 %v3176_v14  ;;  %3209 = vmatpush3.bf16.msra.mxu1 %v3208_v15  ;;  %v3977_v46 = vmax.f32 %v796_v35, 0.0  ;;  %v3979_v47 = vmax.f32 %v837_v37, 0.0  ;;  %v1080_v35 = vld [vmem:[%s4491_s5 + $0x2e0] sm:$0xff]  ;;  %v1113_v38 = vld [vmem:[%s4491_s5 + $0x3e8] sm:$0xff]  ;;  %v598_v39 = vsub.s32 6, %v3610_v11  ;;  %v3192_v40 = vpack.c.bf16 %v1063_v25, %v1062_v24  ;;  %v3307_v24 = vld [vmem:[%s4494_s8 + $0x90] sm:$0xff]  }
 0x1b0   : > { %3179 = vmatprep.subr.bf16.mxu0 %v3178_v20  ;;  %3211 = vmatprep.subr.bf16.mxu1 %v3210_v21  ;;  %v1112_v37 = vld [vmem:[%s4491_s5 + $0x3e0] sm:$0xff]  ;;  %v3300_v13 = vld [vmem:[%s4494_s8 + $0x48] sm:$0xff]   ;;  %v3308_v25 = vld [vmem:[%s4494_s8 + $0x58] sm:$0xff]  }
 0x1b1   : > { %1327 = vmatprep.mubr.f32.mxu0 %v3977_v46  ;;  %1397 = vmatprep.mubr.f32.mxu1 %v3979_v47  ;;  %v599_v56 = vrot.slane %v3858_v30, %v598_v39  ;;  %v3317_v39 = vld [vmem:[%s4494_s8 + $0xe8] sm:$0xff]  }
 0x1b3   : > { %3181 = vmatpush3.bf16.msra.mxu0 %v3180_v42  ;;  %3213 = vmatpush3.bf16.msra.mxu1 %v3212_v43  ;;  %v4016_v1 = vpop.f32.mrb[8].mxu0  ;;  %v977_v3 = vpop.f32.mrb[8].mxu1  ;;  %v3224_v42 = vpack.c.bf16 %v1095_v34, %v1094_v33  ;;  %v1064_v43 = vld [vmem:[%s4491_s5 + $0x260] sm:$0xff]  ;;  %v835_v32 = vadd.f32 %v3946_v19, %v599_v56  ;;  %v3311_v33 = vld [vmem:[%s4494_s8 + $0x98] sm:$0xff]  }
 0x1b4   : > { %3183 = vmatprep.subr.bf16.mxu0 %v3182_v48  ;;  %3215 = vmatprep.subr.bf16.mxu1 %v3214_v49  ;;  %v938_v7 = vpop.f32.mrb[9].mxu0  ;;  %v4027_v8 = vadd.f32 %v977_v3, %v863_v53  ;;  %v979_v9 = vpop.f32.mrb[9].mxu1  ;;  %v3194_v48 = vpack.c.bf16 %v1081_v36, %v1080_v35  ;;  %v3226_v49 = vpack.c.bf16 %v1113_v38, %v1112_v37  ;;  %v1083_v53 = vld [vmem:[%s4491_s5 + $0x2f8] sm:$0xff]  ;;  %v3296_v19 = vld [vmem:[%s4494_s8 + $0x40] sm:$0xff]   ;;  %v3316_v38 = vld [vmem:[%s4494_s8 + $0x68] sm:$0xff]  }
 0x1b5   : > { %v4038_v14 = vadd.f32 %v938_v7, %v859_v29  ;;  %v940_v15 = vpop.f32.mrb[10].mxu0  ;;  %v4040_v16 = vadd.f32 %v979_v9, %v867_v58  ;;  %v981_v17 = vpop.f32.mrb[10].mxu1  ;;  %v3196_v29 = vpack.c.bf16 %v1065_v44, %v1064_v43  ;;  %v3228_v58 = vpack.c.bf16 %v1097_v51, %v1096_v50  ;;  %v1067_v3 = vld [vmem:[%s4491_s5 + $0x278] sm:$0xff]  ;;  %v3312_v34 = vld [vmem:[%s4494_s8 + $0x60] sm:$0xff]   ;;  %v3320_v43 = vld [vmem:[%s4494_s8 + $0x70] sm:$0xff]  }
 0x1b6   : > { %v941_v20 = vpop.f32.mrb[11].mxu0  ;;  %v982_v21 = vpop.f32.mrb[11].mxu1  ;;  %v3198_v63 = vpack.c.bf16 %v1083_v53, %v1082_v52  ;;  %v4108_v7 = vmax.f32 %v835_v32, 0.0  ;;  %v3301_v15 = vld [vmem:[%s4494_s8 + $0xc8] sm:$0xff]   ;;  %v3313_v35 = vld [vmem:[%s4494_s8 + $0xe0] sm:$0xff]   ;;  %v3321_v44 = vld [vmem:[%s4494_s8 + $0xf0] sm:$0xff]  }
 0x1b7   : > { %3185 = vmatpush3.bf16.msra.mxu0 %v3184_v59  ;;  %3217 = vmatpush3.bf16.msra.mxu1 %v3216_v62  ;;  %v1066_v59 = vld [vmem:[%s4491_s5 + $0x270] sm:$0xff]  ;;  %v591_v62 = vrot.slane %v3858_v30, %v590_v45  ;;  %v3302_v17 = vld [vmem:[%s4494_s8 + $0x8] sm:$0xff]   ;;  %v3314_v36 = vld [vmem:[%s4494_s8 + $0x20] sm:$0xff]  }
 0x1b8   : > { %3187 = vmatprep.subr.bf16.mxu0 %v3186_v31  ;;  %3219 = vmatprep.subr.bf16.mxu1 %v3218_v4  ;;  %v1098_v31 = vld [vmem:[%s4491_s5 + $0x370] sm:$0xff]  ;;  %v1099_v4 = vld [vmem:[%s4491_s5 + $0x378] sm:$0xff]  ;;  %v3200_v30 = vpack.c.bf16 %v1067_v3, %v1066_v59  ;;  %v3303_v20 = vld [vmem:[%s4494_s8 + $0x88] sm:$0xff]  }
 0x1b9   : > { %v3232_v5 = vpack.c.bf16 %v1099_v4, %v1098_v31  ;;  %v794_v6 = vadd.f32 %v3944_v18, %v591_v62  ;;  %v3297_v18 = vld [vmem:[%s4494_s8 + $0xc0] sm:$0xff]   ;;  %v3304_v21 = vld [vmem:[%s4494_s8 + $0x50] sm:$0xff]  }
 0x1ba   : > { %v3315_v37 = vld [vmem:[%s4494_s8 + $0xa0] sm:$0xff]   ;;  %v3322_v45 = vld [vmem:[%s4494_s8 + $0x30] sm:$0xff]  }
 0x1bb   : > { %3189 = vmatpush3.bf16.msra.mxu0 %v3188_v22  ;;  %3221 = vmatpush3.bf16.msra.mxu1 %v3220_v23  ;;  %v4110_v9 = vmax.f32 %v794_v6, 0.0  ;;  %v3305_v22 = vld [vmem:[%s4494_s8 + $0xd0] sm:$0xff]   ;;  %v2703_v51 = vld [vmem:[#allocation3] ss:$0 sm:$0xff] }
 0x1bc   : > { %3191 = vmatprep.subr.bf16.mxu0 %v3190_v26  ;;  %3223 = vmatprep.subr.bf16.mxu1 %v3222_v27  ;;  %v3306_v23 = vld [vmem:[%s4494_s8 + $0x10] sm:$0xff]   ;;  %v3309_v26 = vld [vmem:[%s4494_s8 + $0xd8] sm:$0xff]  }
 0x1bd   : > { %v3310_v27 = vld [vmem:[%s4494_s8 + $0x18] sm:$0xff]  }
 0x1bf   : > { %3193 = vmatpush3.bf16.msra.mxu0 %v3192_v40  ;;  %3225 = vmatpush3.bf16.msra.mxu1 %v3224_v42  ;;  %v3318_v40 = vld [vmem:[%s4494_s8 + $0x28] sm:$0xff]  }
 0x1c0   : > { %3195 = vmatprep.subr.bf16.mxu0 %v3194_v48  ;;  %3227 = vmatprep.subr.bf16.mxu1 %v3226_v49  ;;  %v3319_v42 = vld [vmem:[%s4494_s8 + $0xa8] sm:$0xff]   ;;  %v3323_v48 = vld [vmem:[%s4494_s8 + $0xb0] sm:$0xff]  }
 0x1c3   : > { %3197 = vmatpush3.bf16.msra.mxu0 %v3196_v29  ;;  %3229 = vmatpush3.bf16.msra.mxu1 %v3228_v58 }
 0x1c4   : > { %3199 = vmatprep.subr.bf16.mxu0 %v3198_v63  ;;  %3231 = vmatprep.subr.bf16.mxu1 %v3230_v0 }
 0x1c7   : > { %3201 = vmatpush3.bf16.msra.mxu0 %v3200_v30  ;;  %3233 = vmatpush3.bf16.msra.mxu1 %v3232_v5 }
 0x1c8   : > { %2953 = vmatprep.subr.bf16.mxu0 %v3296_v19  ;;  %2975 = vmatprep.subr.bf16.mxu1 %v3297_v18  ;;  %v3324_v19 = vld [vmem:[%s4494_s8 + $0x78] sm:$0xff]  }
 0x1c9   : > { %v3325_v18 = vld [vmem:[%s4494_s8 + $0xf8] sm:$0xff]  }
 0x1ca   : > { %1328 = vmatmul.mubr.f32.vlgmr.msra.gmra.mrb[14].mxu0 %v4110_v9  ;;  %1398 = vmatmul.mubr.f32.vlgmr.msra.gmra.mrb[14].mxu1 %v4108_v7 }
 0x1cb   : > { %2954 = vmatpush3.bf16.msra.mxu0 %v3298_v10  ;;  %2976 = vmatpush3.bf16.msra.mxu1 %v3299_v12  ;;  %v3475_v10 = vmov 1.0  }
 0x1cc   : > { %2955 = vmatprep.subr.bf16.mxu0 %v3300_v13  ;;  %2977 = vmatprep.subr.bf16.mxu1 %v3301_v15  ;;  %v3326_v13 = vld [vmem:[%s4494_s8 + $0x38] sm:$0xff]  }
 0x1cd   : > { %v3327_v15 = vld [vmem:[%s4494_s8 + $0xb8] sm:$0xff]  }
 0x1cf   : > { %2956 = vmatpush3.bf16.msra.mxu0 %v3302_v17  ;;  %2978 = vmatpush3.bf16.msra.mxu1 %v3303_v20  ;;  %v3328_v17 = vld [vmem:[%s4493_s7 + $0x40] sm:$0xff]  }
 0x1d0   : > { %2957 = vmatprep.subr.bf16.mxu0 %v3304_v21  ;;  %2979 = vmatprep.subr.bf16.mxu1 %v3305_v22  ;;  %v3329_v20 = vld [vmem:[%s4493_s7 + $0xc0] sm:$0xff]   ;;  %v855_v21 = vrot.slane %v3969_v41, %v574_v28 }
 0x1d1   : > { %v3330_v28 = vld [vmem:[%s4493_s7] sm:$0xff]  }
 0x1d2   : > { %v937_v22 = vadd.f32 %v4016_v1, %v855_v21  ;;  %v3331_v41 = vld [vmem:[%s4493_s7 + $0x80] sm:$0xff]   ;;  %v3332_v1 = vld [vmem:[%s4493_s7 + $0x48] sm:$0xff]   ;;  %v3371_v21 = vld [vmem:[%s4493_s7 + $0x190] sm:$0xff]  }
 0x1d3   : > { %2958 = vmatpush3.bf16.msra.mxu0 %v3306_v23  ;;  %2980 = vmatpush3.bf16.msra.mxu1 %v3307_v24  ;;  %v985_v24 = vmax.f32 %v4038_v14, 0.0  ;;  %v1421_v14 = vpack.c.bf16 %v3902_v60, %v3902_v60  ;;  %v3336_v60 = vld [vmem:[%s4493_s7 + $0x50] sm:$0xff]  }
 0x1d4   : > { %2959 = vmatprep.subr.bf16.mxu0 %v3308_v25  ;;  %2981 = vmatprep.subr.bf16.mxu1 %v3309_v26  ;;  %v984_v23 = vmax.f32 %v937_v22, 0.0  ;;  %v986_v25 = vmax.f32 %v4027_v8, 0.0  ;;  %v987_v26 = vmax.f32 %v4040_v16, 0.0  ;;  %v3333_v8 = vld [vmem:[%s4493_s7 + $0xc8] sm:$0xff]   ;;  %v1423_v16 = vpack.c.bf16 %v3904_v61, %v3904_v61  ;;  %v3337_v61 = vld [vmem:[%s4493_s7 + $0xd0] sm:$0xff]   ;;  %v3372_v22 = vld [vmem:[%s4493_s7 + $0x158] sm:$0xff]  }
 0x1d7   : > { %2960 = vmatpush3.bf16.msra.mxu0 %v3310_v27  ;;  %2982 = vmatpush3.bf16.msra.mxu1 %v3311_v33 }
 0x1d8   : > { %2961 = vmatprep.subr.bf16.mxu0 %v3312_v34  ;;  %2983 = vmatprep.subr.bf16.mxu1 %v3313_v35 }
 0x1db   : > { %2962 = vmatpush3.bf16.msra.mxu0 %v3314_v36  ;;  %2984 = vmatpush3.bf16.msra.mxu1 %v3315_v37 }
 0x1dc   : > { %2963 = vmatprep.subr.bf16.mxu0 %v3316_v38  ;;  %2985 = vmatprep.subr.bf16.mxu1 %v3317_v39 }
 0x1df   : > { %2964 = vmatpush3.bf16.msra.mxu0 %v3318_v40  ;;  %2986 = vmatpush3.bf16.msra.mxu1 %v3319_v42  ;;  %v3334_v40 = vld [vmem:[%s4493_s7 + $0x8] sm:$0xff]  }
 0x1e0   : > { %2965 = vmatprep.subr.bf16.mxu0 %v3320_v43  ;;  %2987 = vmatprep.subr.bf16.mxu1 %v3321_v44  ;;  %v3335_v42 = vld [vmem:[%s4493_s7 + $0x88] sm:$0xff]   ;;  %v3338_v43 = vld [vmem:[%s4493_s7 + $0x10] sm:$0xff]  }
 0x1e1   : > { %v3339_v44 = vld [vmem:[%s4493_s7 + $0x90] sm:$0xff]  }
 0x1e3   : > { %2966 = vmatpush3.bf16.msra.mxu0 %v3322_v45  ;;  %2988 = vmatpush3.bf16.msra.mxu1 %v3323_v48  ;;  %v3340_v45 = vld [vmem:[%s4493_s7 + $0x58] sm:$0xff]  }
 0x1e4   : > { %2967 = vmatprep.subr.bf16.mxu0 %v3324_v19  ;;  %2989 = vmatprep.subr.bf16.mxu1 %v3325_v18  ;;  %v3341_v48 = vld [vmem:[%s4493_s7 + $0xd8] sm:$0xff]   ;;  %v1420_v19 = vpack.c.bf16 %v3912_v2, %v3912_v2  ;;  %v1422_v18 = vpack.c.bf16 %v3900_v57, %v3900_v57  ;;  %v3365_v2 = vld [vmem:[%s4493_s7 + $0x1c8] sm:$0xff]   ;;  %v1427_v57 = vpack.c.bf16 %v3979_v47, %v3979_v47  ;;  %v3369_v47 = vld [vmem:[%s4493_s7 + $0x1d0] sm:$0xff]  }
 0x1e7   : > { %2968 = vmatpush3.bf16.msra.mxu0 %v3326_v13  ;;  %2990 = vmatpush3.bf16.msra.mxu1 %v3327_v15  ;;  %v3364_v13 = vld [vmem:[%s4493_s7 + $0x148] sm:$0xff]  }
 0x1e8   : > { %2997 = vmatprep.subr.bf16.mxu0 %v3328_v17  ;;  %3019 = vmatprep.subr.bf16.mxu1 %v3329_v20  ;;  %v3366_v15 = vld [vmem:[%s4493_s7 + $0x108] sm:$0xff]   ;;  %v3368_v17 = vld [vmem:[%s4493_s7 + $0x150] sm:$0xff]  }
 0x1e9   : > { %v3370_v20 = vld [vmem:[%s4493_s7 + $0x110] sm:$0xff]  }
 0x27d   : > { %v2845_v49 = vpop.f32.mrb[12].mxu0  ;;  %v2880_v50 = vpop.f32.mrb[12].mxu1 }
 0x27e   : > { %v2846_v52 = vpop.f32.mrb[13].mxu0  ;;  %v2881_v53 = vpop.f32.mrb[13].mxu1 }
 0x27f   : > { %v2847_v54 = vadd.f32 %v2846_v52, %v2845_v49  ;;  %v2882_v55 = vadd.f32 %v2881_v53, %v2880_v50  ;;  %v3342_v49 = vld [vmem:[%s4493_s7 + $0x18] sm:$0xff]   ;;  %v3345_v52 = vld [vmem:[%s4493_s7 + $0xe0] sm:$0xff]  }
 0x280   : > { %v3343_v50 = vld [vmem:[%s4493_s7 + $0x98] sm:$0xff]   ;;  %v3346_v53 = vld [vmem:[%s4493_s7 + $0x20] sm:$0xff]  }
 0x281   : > { %v1190_v56 = vadd.f32 %v2847_v54, %v2703_v51  ;;  %v3344_v51 = vld [vmem:[%s4493_s7 + $0x60] sm:$0xff]  }
 0x282   : > { %v3347_v54 = vld [vmem:[%s4493_s7 + $0xa0] sm:$0xff]  }
 0x283   : > { %v1260_v29 = vadd.f32 %v2882_v55, %v1190_v56  ;;  %v3348_v55 = vld [vmem:[%s4493_s7 + $0x68] sm:$0xff]  }
 0x284   : > { %v3349_v56 = vld [vmem:[%s4493_s7 + $0xe8] sm:$0xff]  }
 0x29d   : > { %v2915_v58 = vpop.f32.mrb[14].mxu0  ;;  %v2950_v59 = vpop.f32.mrb[14].mxu1 }
 0x29e   : > { %v2916_v62 = vpop.f32.mrb[15].mxu0  ;;  %v2951_v63 = vpop.f32.mrb[15].mxu1 }
 0x29f   : > { %v2917_v0 = vadd.f32 %v2916_v62, %v2915_v58  ;;  %v2952_v3 = vadd.f32 %v2951_v63, %v2950_v59  ;;  %v3351_v58 = vld [vmem:[%s4493_s7 + $0xa8] sm:$0xff]   ;;  %v3352_v59 = vld [vmem:[%s4493_s7 + $0x70] sm:$0xff]  }
 0x2a0   : > { %v3353_v62 = vld [vmem:[%s4493_s7 + $0xf0] sm:$0xff]  }
 0x2a1   : > { %v1330_v31 = vadd.f32 %v2917_v0, %v1260_v29  ;;  %v3350_v29 = vld [vmem:[%s4493_s7 + $0x28] sm:$0xff]   ;;  %v3354_v63 = vld [vmem:[%s4493_s7 + $0x30] sm:$0xff]  }
 0x2a2   : > { %v3355_v0 = vld [vmem:[%s4493_s7 + $0xb0] sm:$0xff]  }
 0x2a3   : > { %v1400_v4 = vadd.f32 %v2952_v3, %v1330_v31  ;;  %v3356_v3 = vld [vmem:[%s4493_s7 + $0x78] sm:$0xff]  }
 0x2a4   : > { %v3357_v31 = vld [vmem:[%s4493_s7 + $0xf8] sm:$0xff]  }
 0x2a5   : > { %v2704_v32 = vmul.f32 -1.442695, %v1400_v4  ;;  %v3358_v4 = vld [vmem:[%s4493_s7 + $0x38] sm:$0xff]  }
 0x2a7   : > { %3394 = vpow2.f32 %v2704_v32  ;;  %v3359_v32 = vld [vmem:[%s4493_s7 + $0xb8] sm:$0xff]  }
 0x2b1   : > { %v3395_v30 = vpop.eup %3394 }
 0x2b2   : > { %v1406_v5 = vadd.f32 1.0, %v3395_v30  ;;  %v3360_v30 = vld [vmem:[%s4493_s7 + $0x140] sm:$0xff]  }
 0x2b4   : > { %3396 = vrcp.f32 %v1406_v5  ;;  %v3361_v5 = vld [vmem:[%s4493_s7 + $0x1c0] sm:$0xff]  }
 0x2be   : > { %v3397_v6 = vpop.eup %3396 }
 0x2bf   : > { %vm1409_vm6 = vcmp.lt.f32.partialorder %v3397_v6, 0.5 }
 0x2c0   : > { %v1410_v12 = vsel %vm1409_vm6, 0.5, %v3475_v10  ;;  %v3363_v10 = vld [vmem:[%s4493_s7 + $0x180] sm:$0xff]  }
 0x2c1   : > { %1413 = vperm.xlu0 %3292, %v1410_v12   ;;  %v1425_v12 = vpack.c.bf16 %v3977_v46, %v3977_v46  ;;  %v3367_v46 = vld [vmem:[%s4493_s7 + $0x188] sm:$0xff]  }
 0x2c5   : > { %2610 = vrot.lane.b32.xlu0 %v3397_v6, %s3476_s22  ;;  %v3362_v6 = vld [vmem:[%s4493_s7 + $0x100] sm:$0xff]  }
 0x340   : > { %v1414_v27 = vpop.permute.xlu0 %1413 }
 0x341   : > { %v1416_v33 = vmul.f32 %v1414_v27, %v984_v23  ;;  %v1418_v34 = vmul.f32 %v1414_v27, %v986_v25  ;;  %v1417_v35 = vmul.f32 %v1414_v27, %v985_v24  ;;  %v1419_v36 = vmul.f32 %v1414_v27, %v987_v26  ;;  %v3373_v23 = vld [vmem:[%s4493_s7 + $0x1d8] sm:$0xff]   ;;  %v3376_v26 = vld [vmem:[%s4493_s7 + $0x160] sm:$0xff]  }
 0x342   : > { %v3374_v24 = vld [vmem:[%s4493_s7 + $0x118] sm:$0xff]   ;;  %v3377_v27 = vld [vmem:[%s4493_s7 + $0x1e0] sm:$0xff]  }
 0x343   : > { %v1556_v37 = vpack.c.bf16 %v1416_v33, %v1416_v33  ;;  %v1558_v38 = vpack.c.bf16 %v1418_v34, %v1418_v34  ;;  %v1557_v39 = vpack.c.bf16 %v1417_v35, %v1417_v35  ;;  %v1559_v11 = vpack.c.bf16 %v1419_v36, %v1419_v36  ;;  %v3375_v25 = vld [vmem:[%s4493_s7 + $0x198] sm:$0xff]   ;;  %v3378_v33 = vld [vmem:[%s4493_s7 + $0x120] sm:$0xff]   ;;  %v3380_v35 = vld [vmem:[%s4493_s7 + $0x168] sm:$0xff]  }
 0x344   : > { %v3379_v34 = vld [vmem:[%s4493_s7 + $0x1a0] sm:$0xff]   ;;  %v3381_v36 = vld [vmem:[%s4493_s7 + $0x1e8] sm:$0xff]  }
 0x345   : > { %1848 = vmatprep.mubr.bf16.mxu0 %v1557_v39  ;;  %1888 = vmatprep.mubr.bf16.mxu1 %v1559_v11  ;;  %v3384_v39 = vld [vmem:[%s4493_s7 + $0x170] sm:$0xff]  }
 0x346   : > { %1849 = vmatmul.mubr.bf16.vlgmr.msra.gmra.mrb[16].mxu0 %v1556_v37  ;;  %1889 = vmatmul.mubr.bf16.vlgmr.msra.gmra.mrb[16].mxu1 %v1558_v38  ;;  %v3382_v37 = vld [vmem:[%s4493_s7 + $0x128] sm:$0xff]   ;;  %v3385_v11 = vld [vmem:[%s4493_s7 + $0x1f0] sm:$0xff]  }
 0x347   : > { %2998 = vmatpush3.bf16.msra.mxu0 %v3330_v28  ;;  %3020 = vmatpush3.bf16.msra.mxu1 %v3331_v41  ;;  %v3383_v38 = vld [vmem:[%s4493_s7 + $0x1a8] sm:$0xff]   ;;  %v3386_v28 = vld [vmem:[%s4493_s7 + $0x130] sm:$0xff]  }
 0x348   : > { %2312 = vmatprep.mubr.bf16.mxu0 %v1421_v14  ;;  %2352 = vmatprep.mubr.bf16.mxu1 %v1423_v16  ;;  %v3387_v41 = vld [vmem:[%s4493_s7 + $0x1b0] sm:$0xff]   ;;  %v3390_v14 = vld [vmem:[%s4493_s7 + $0x138] sm:$0xff]  }
 0x349   : > { %2999 = vmatprep.subr.bf16.mxu0 %v3332_v1  ;;  %3021 = vmatprep.subr.bf16.mxu1 %v3333_v8  ;;  %v3388_v1 = vld [vmem:[%s4493_s7 + $0x178] sm:$0xff]  }
 0x34a   : > { %v3389_v8 = vld [vmem:[%s4493_s7 + $0x1f8] sm:$0xff]  }
 0x34b   : > { %3000 = vmatpush3.bf16.msra.mxu0 %v3334_v40  ;;  %3022 = vmatpush3.bf16.msra.mxu1 %v3335_v42  ;;  %v3391_v16 = vld [vmem:[%s4493_s7 + $0x1b8] sm:$0xff]   ;;  %v1424_v40 = vpack.c.bf16 %v4110_v9, %v4110_v9  ;;  %v1426_v42 = vpack.c.bf16 %v4108_v7, %v4108_v7  ;;  %v2518_v7 = vld [vmem:[%s4498_s12] sm:$0xff]  ;;  %v2519_v9 = vld [vmem:[%s4498_s12 + $0x8] sm:$0xff] }
 0x34c   : > { %3001 = vmatprep.subr.bf16.mxu0 %v3336_v60  ;;  %3023 = vmatprep.subr.bf16.mxu1 %v3337_v61  ;;  %v3392_v60 = vld [vmem:[%s4496_s10] sm:$0xff]   ;;  %v3477_v61 = vmov 0.0  }
 0x34f   : > { %3002 = vmatpush3.bf16.msra.mxu0 %v3338_v43  ;;  %3024 = vmatpush3.bf16.msra.mxu1 %v3339_v44  ;;  %v3393_v43 = vld [vmem:[%s4496_s10 + $0x8] sm:$0xff]   ;;  %v3479_v44 = vmov 0.0|0.0  }
 0x350   : > { %3003 = vmatprep.subr.bf16.mxu0 %v3340_v45  ;;  %3025 = vmatprep.subr.bf16.mxu1 %v3341_v48  ;;  %v3235_v45 = vpack.c.bf16 %v2519_v9, %v2518_v7 }
 0x353   : > { %3004 = vmatpush3.bf16.msra.mxu0 %v3342_v49  ;;  %3026 = vmatpush3.bf16.msra.mxu1 %v3343_v50 }
 0x354   : > { %3005 = vmatprep.subr.bf16.mxu0 %v3344_v51  ;;  %3027 = vmatprep.subr.bf16.mxu1 %v3345_v52 }
 0x357   : > { %3006 = vmatpush3.bf16.msra.mxu0 %v3346_v53  ;;  %3028 = vmatpush3.bf16.msra.mxu1 %v3347_v54 }
 0x358   : > { %3007 = vmatprep.subr.bf16.mxu0 %v3348_v55  ;;  %3029 = vmatprep.subr.bf16.mxu1 %v3349_v56 }
 0x35b   : > { %3008 = vmatpush3.bf16.msra.mxu0 %v3350_v29  ;;  %3030 = vmatpush3.bf16.msra.mxu1 %v3351_v58 }
 0x35c   : > { %3009 = vmatprep.subr.bf16.mxu0 %v3352_v59  ;;  %3031 = vmatprep.subr.bf16.mxu1 %v3353_v62 }
 0x35f   : > { %3010 = vmatpush3.bf16.msra.mxu0 %v3354_v63  ;;  %3032 = vmatpush3.bf16.msra.mxu1 %v3355_v0 }
 0x360   : > { %3011 = vmatprep.subr.bf16.mxu0 %v3356_v3  ;;  %3033 = vmatprep.subr.bf16.mxu1 %v3357_v31 }
 0x363   : > { %3012 = vmatpush3.bf16.msra.mxu0 %v3358_v4  ;;  %3034 = vmatpush3.bf16.msra.mxu1 %v3359_v32 }
 0x364   : > { %3041 = vmatprep.subr.bf16.mxu0 %v3360_v30  ;;  %3063 = vmatprep.subr.bf16.mxu1 %v3361_v5 }
 0x366   : > { %2313 = vmatmul.mubr.bf16.vlgmr.msra.gmra.mrb[20].mxu0 %v1420_v19  ;;  %2353 = vmatmul.mubr.bf16.vlgmr.msra.gmra.mrb[20].mxu1 %v1422_v18 }
 0x367   : > { %3042 = vmatpush3.bf16.msra.mxu0 %v3362_v6  ;;  %2392 = vmatprep.mubr.bf16.mxu0 %v1425_v12 }
 0x368   : > { %3064 = vmatpush3.bf16.msra.mxu1 %v3363_v10  ;;  %2432 = vmatprep.mubr.bf16.mxu1 %v1427_v57 }
 0x369   : > { %3043 = vmatprep.subr.bf16.mxu0 %v3364_v13  ;;  %3065 = vmatprep.subr.bf16.mxu1 %v3365_v2 }
 0x36b   : > { %3044 = vmatpush3.bf16.msra.mxu0 %v3366_v15 }
 0x36c   : > { %3066 = vmatpush3.bf16.msra.mxu1 %v3367_v46  ;;  %3045 = vmatprep.subr.bf16.mxu0 %v3368_v17 }
 0x36d   : > { %3067 = vmatprep.subr.bf16.mxu1 %v3369_v47 }
 0x36f   : > { %3046 = vmatpush3.bf16.msra.mxu0 %v3370_v20 }
 0x370   : > { %3068 = vmatpush3.bf16.msra.mxu1 %v3371_v21  ;;  %3047 = vmatprep.subr.bf16.mxu0 %v3372_v22  ;;  %v2801_v21 = vld [vmem:[%s4495_s9] ss:$0 sm:$0xff] }
 0x371   : > { %3069 = vmatprep.subr.bf16.mxu1 %v3373_v23 }
 0x373   : > { %3048 = vmatpush3.bf16.msra.mxu0 %v3374_v24 }
 0x374   : > { %3070 = vmatpush3.bf16.msra.mxu1 %v3375_v25  ;;  %3049 = vmatprep.subr.bf16.mxu0 %v3376_v26  ;;  %v2802_v26 = vld [vmem:[%s4497_s11] ss:$0 sm:$0xff] }
 0x375   : > { %3071 = vmatprep.subr.bf16.mxu1 %v3377_v27 }
 0x377   : > { %3050 = vmatpush3.bf16.msra.mxu0 %v3378_v33 }
 0x378   : > { %3072 = vmatpush3.bf16.msra.mxu1 %v3379_v34  ;;  %3051 = vmatprep.subr.bf16.mxu0 %v3380_v35 }
 0x379   : > { %3073 = vmatprep.subr.bf16.mxu1 %v3381_v36 }
 0x37b   : > { %3052 = vmatpush3.bf16.msra.mxu0 %v3382_v37 }
 0x37c   : > { %3074 = vmatpush3.bf16.msra.mxu1 %v3383_v38  ;;  %3053 = vmatprep.subr.bf16.mxu0 %v3384_v39  ;;  %v2806_v38 = vld [vmem:[#allocation4] ss:$0 sm:$0xff] }
 0x37d   : > { %3075 = vmatprep.subr.bf16.mxu1 %v3385_v11 }
 0x37f   : > { %3054 = vmatpush3.bf16.msra.mxu0 %v3386_v28 }
 0x380   : > { %3076 = vmatpush3.bf16.msra.mxu1 %v3387_v41  ;;  %3055 = vmatprep.subr.bf16.mxu0 %v3388_v1 }
 0x381   : > { %3077 = vmatprep.subr.bf16.mxu1 %v3389_v8 }
 0x383   : > { %3056 = vmatpush3.bf16.msra.mxu0 %v3390_v14 }
 0x384   : > { %3078 = vmatpush3.bf16.msra.mxu1 %v3391_v16  ;;  %3091 = vmatprep.subr.bf16.mxu0 %v3477_v61  ;;  %v2611_v16 = vpop.permute.xlu0 %2610 }
 0x385   : > { %3234 = vmatprep.subr.bf16.mxu1 %v3479_v44 }
 0x386   : > { %2393 = vmatmul.mubr.bf16.vlgmr.msra.gmra.mrb[24].mxu0 %v1424_v40 }
 0x387   : > { %2433 = vmatmul.mubr.bf16.vlgmr.msra.gmra.mrb[24].mxu1 %v1426_v42  ;;  %3092 = vmatpush3.bf16.msra.mxu0 %v3392_v60 }
 0x388   : > { %3093 = vmatprep.subr.bf16.mxu0 %v3477_v61  ;;  %3095 = vmatprep.mubr.msk.bf16.mxu0 %vm3478_vm7, %v3477_v61 }
 0x389   : > { %3103 = vmatprep.mubr.msk.f32.mxu1 %vm3478_vm7, %v3477_v61  ;;  %3236 = vmatpush3.bf16.msra.mxu1 %v3235_v45 }
 0x38b   : > { %3094 = vmatpush3.bf16.msra.mxu0 %v3393_v43 }
 0x419   : > { %v2969_v48 = vpop.f32.mrb[16].mxu0  ;;  %v2991_v49 = vpop.f32.mrb[16].mxu1 }
 0x41a   : > { %v2970_v50 = vpop.f32.mrb[17].mxu0  ;;  %v2992_v51 = vpop.f32.mrb[17].mxu1 }
 0x41b   : > { %v2971_v52 = vadd.f32 %v2970_v50, %v2969_v48  ;;  %v2993_v53 = vadd.f32 %v2992_v51, %v2991_v49  ;;  %v2972_v54 = vpop.f32.mrb[18].mxu0  ;;  %v2994_v55 = vpop.f32.mrb[18].mxu1 }
 0x41c   : > { %v2973_v56 = vpop.f32.mrb[19].mxu0  ;;  %v2995_v29 = vpop.f32.mrb[19].mxu1 }
 0x41d   : > { %v1891_v58 = vadd.f32 %v2993_v53, %v2971_v52 }
 0x439   : > { %v3013_v59 = vpop.f32.mrb[20].mxu0  ;;  %v3035_v62 = vpop.f32.mrb[20].mxu1 }
 0x43a   : > { %v3014_v63 = vpop.f32.mrb[21].mxu0  ;;  %v3036_v0 = vpop.f32.mrb[21].mxu1 }
 0x43b   : > { %v3015_v3 = vadd.f32 %v3014_v63, %v3013_v59  ;;  %v3037_v31 = vadd.f32 %v3036_v0, %v3035_v62  ;;  %v3016_v4 = vpop.f32.mrb[22].mxu0  ;;  %v3038_v32 = vpop.f32.mrb[22].mxu1 }
 0x43c   : > { %v3017_v30 = vpop.f32.mrb[23].mxu0  ;;  %v3039_v5 = vpop.f32.mrb[23].mxu1 }
 0x43d   : > { %v2315_v6 = vadd.f32 %v3015_v3, %v1891_v58 }
 0x43f   : > { %v2355_v19 = vadd.f32 %v3037_v31, %v2315_v6 }
 0x459   : > { %v3057_v18 = vpop.f32.mrb[24].mxu0 }
 0x45a   : > { %v3079_v10 = vpop.f32.mrb[24].mxu1  ;;  %v3058_v12 = vpop.f32.mrb[25].mxu0 }
 0x45b   : > { %v3059_v13 = vadd.f32 %v3058_v12, %v3057_v18  ;;  %v3080_v2 = vpop.f32.mrb[25].mxu1  ;;  %v3060_v57 = vpop.f32.mrb[26].mxu0 }
 0x45c   : > { %v3081_v15 = vadd.f32 %v3080_v2, %v3079_v10  ;;  %v3082_v46 = vpop.f32.mrb[26].mxu1  ;;  %v3061_v17 = vpop.f32.mrb[27].mxu0 }
 0x45d   : > { %v2395_v47 = vadd.f32 %v3059_v13, %v2355_v19  ;;  %v3083_v20 = vpop.f32.mrb[27].mxu1 }
 0x45f   : > { %v2435_v22 = vadd.f32 %v3081_v15, %v2395_v47 }
 0x461   : > { %v2447_v23 = vadd.f32 %v2801_v21, %v2435_v22 }
 0x463   : > { %v2448_v24 = vmax.f32 %v2447_v23, 0.0 }
 0x465   : > { %v2449_v25 = vpack.c.bf16 %v2448_v24, %v2448_v24 }
 0x467   : > { %3096 = vmatmul.mubr.msk.bf16.vlgmr.msra.gmra.mrb[28].mxu0 %vm2473_vm8, %v2449_v25 }
 0x53a   : > { %v2511_v27 = vpop.f32.mrb[28].mxu0 }
 0x53b   : > { %v2512_v33 = vadd.f32 %v2802_v26, %v2511_v27  ;;  %v3097_v34 = vpop.f32.mrb[29].mxu0 }
 0x53c   : > { %v2514_v35 = vpop.f32.mrb[30].mxu0 }
 0x53d   : > { %v2517_v36 = vmax.f32 %v2512_v33, 0.0  ;;  %v3098_v37 = vpop.f32.mrb[31].mxu0 }
 0x53f   : > { %3104 = vmatmul.mubr.msk.f32.vlgmr.msra.gmra.mrb[28].mxu1 %vm2527_vm9, %v2517_v36 }
 0x612   : > { %v2597_v39 = vpop.f32.mrb[28].mxu1 }
 0x613   : > { %v2598_v11 = vadd.f32 %v2806_v38, %v2597_v39  ;;  %v3105_v28 = vpop.f32.mrb[29].mxu1 }
 0x615   : > { %v2808_v41 = vmul.f32 -1.442695, %v2598_v11 }
 0x617   : > { %3398 = vpow2.f32 %v2808_v41 }
 0x621   : > { %v3399_v1 = vpop.eup %3398 }
 0x622   : > { %v2604_v8 = vadd.f32 1.0, %v3399_v1 }
 0x624   : > { %3400 = vrcp.f32 %v2604_v8 }
 0x62e   : > { %v3401_v14 = vpop.eup %3400 }
 0x62f   : > { %2608 = vst.msk [vmem:[#allocation6] sm:$0x3] %vm2607_vm10, %v3401_v14 }
 0x630   : > { %2614 = vst.msk [vmem:[#allocation6] sm:$0x3] %vm2613_vm11, %v2611_v16 }
 0x631 PF: > { %p4445_p11 = scmp.eq.s32.totalorder %s2682_s6, 1  ;;  %s3480_s19 = smov [#allocation6]  }
 0x632   : > { %s2624_s28 = sshll.u32 %s3480_s19, 4  ;;  %s2625_s28 = int_to_ptr.vmem [resolvable:$true] %s2624_s28 }
 0x633   : > { %s3402_s29 = scalar_lea.vmem %s2625_s28, 32  ;;  %p3409_p1 = scmp.lt.s32.totalorder %s2625_s28, %s2625_s28 }
 0x634   : > { %p3403_p12 = scmp.ne.s32.totalorder %s2625_s28, %s3402_s29  ;;  %p3410_p2 = scmp.lt.s32.totalorder %s3402_s29, %s3402_s29 }
 0x636   : > { %p3404_p13 = pnand %p3403_p12, %p4445_p11  ;;  %p3411_p3 = por %p3410_p2, %p3409_p1 }
 0x638   : > { %p3405_p0 = pneg %p3404_p13 }
 0x63a   : > { %p3412_p4 = pnand %p3411_p3, %p3405_p0 }
 0x63c   : > { %3415 = shalt.err (!%p3412_p4)
}
 0x63d   : > { %s3416_s6 = scalar_lea.hbm %s4499_s14, 32 }
 0x63e   : > { %p3417_p5 = scmp.ne.s32.totalorder %s4499_s14, %s3416_s6  ;;  %p3422_p8 = scmp.lt.u32.totalorder %s3416_s6, %s4499_s14 }
 0x640   : > { %p3418_p6 = pnand %p3417_p5, %p4445_p11 }
 0x642   : > { %p3419_p7 = pneg %p3418_p6 }
 0x644   : > { %p3424_p9 = pnand %p3422_p8, %p3419_p7 }
 0x646   : > { %3427 = shalt.err (!%p3424_p9)
}
 0x647   : > { %3238 = dma.vmem_to_hbm [thread:$0]  (%p4445_p11), %s2625_s28, 32, %s4499_s14, [#allocation7]  }
 0x648   : > { %3449 = dma.done.wait (%p4445_p11), [#allocation7], 32  }
 0x649   : > { %3451 = vsyncadd (%p4445_p11), [#allocation7], 4294967264 }
 0x64a PF: > { %s29_s21 = sadd.s32 1, %s3470_s21   ;;  %s4502_s17 = smov %s3458_s18 }
 0x64b   : > { %p26_p10 = scmp.ge.s32.totalorder %s29_s21, 4   ;;  %s4503_s18 = smov %s3598_s24 }
 0x64c   : > { %s4504_s19 = smov %s3466_s20  ;;  %s4505_s20 = smov %s4507_s13 }
 0x64d   :  { %28 = sbr.rel (!%p26_p10) target bundleno = 6 (0x6), region = 158 }
 0x654   :  { %2637 = vsyncpa [#allocation7], 1 }
 0x655   :  { %2639 = vsyncpa [#allocation7 + $0x1], 1 }

</bundles_post_ra>
